<compile_context>
chip_gen: v7x
topology: tpu7x:2x2x1
jax: 0.10.0
libtpu: 0.0.40
codegen_flags: <defaults>
</compile_context>

<pallas_src>
import functools

import jax
import jax.numpy as jnp
from jax.experimental import pallas as pl
from jax.experimental.pallas import tpu as pltpu


# ---------------------------------------------------------------------------
# Fused transformer-encoder-layer kernel (one (batch) element per grid step)
# ---------------------------------------------------------------------------

def _encoder_layer_kernel(x_ref,
                          in_w_ref, in_b_ref,
                          out_w_ref, out_b_ref,
                          ln1_g_ref, ln1_b_ref,
                          ff1_w_ref, ff1_b_ref,
                          ff2_w_ref, ff2_b_ref,
                          ln2_g_ref, ln2_b_ref,
                          o_ref, *, num_heads, eps):
    x = x_ref[0]                              # (S, H) f32, resident in VMEM
    S, H = x.shape
    Dh = H // num_heads
    scale = 1.0 / float(Dh) ** 0.5

    # ---- packed QKV projection (bf16 MXU, f32 accumulation) ----
    xb = x.astype(jnp.bfloat16)
    qkv = jnp.dot(xb, in_w_ref[...], preferred_element_type=jnp.float32)
    qkv = qkv + in_b_ref[...]                 # (S, 3H) f32
    q = qkv[:, 0:H]
    k = qkv[:, H:2 * H]
    v = qkv[:, 2 * H:3 * H]

    out_w = out_w_ref[...]                    # (H, H) bf16

    # ---- per-head attention; accumulate directly into the out-projection ----
    sa = jnp.zeros((S, H), jnp.float32)
    for h in range(num_heads):
        lo, hi = h * Dh, (h + 1) * Dh
        qh = q[:, lo:hi].astype(jnp.bfloat16)
        kh = k[:, lo:hi].astype(jnp.bfloat16)
        vh = v[:, lo:hi].astype(jnp.bfloat16)
        s = jnp.dot(qh, kh.T, preferred_element_type=jnp.float32) * scale
        m = jnp.max(s, axis=-1, keepdims=True)
        p = jnp.exp(s - m)                    # f32 softmax
        denom = jnp.sum(p, axis=-1, keepdims=True)
        p = p * pl.reciprocal(denom, approx=True)
        oh = jnp.dot(p.astype(jnp.bfloat16), vh,
                     preferred_element_type=jnp.float32)          # (S, Dh)
        # out-projection contribution of this head: oh @ W_o[lo:hi, :]
        sa = sa + jnp.dot(oh.astype(jnp.bfloat16), out_w[lo:hi, :],
                          preferred_element_type=jnp.float32)
    sa = sa + out_b_ref[...]

    # ---- residual + LayerNorm 1 (f32, biased variance like PyTorch) ----
    y = x + sa
    mu = jnp.mean(y, axis=-1, keepdims=True)
    yc = y - mu
    var = jnp.mean(yc * yc, axis=-1, keepdims=True)
    x1 = yc * jax.lax.rsqrt(var + eps) * ln1_g_ref[...] + ln1_b_ref[...]

    # ---- feed-forward (Linear -> ReLU -> Linear), bf16 MXU ----
    h1 = jnp.dot(x1.astype(jnp.bfloat16), ff1_w_ref[...],
                 preferred_element_type=jnp.float32) + ff1_b_ref[...]
    h1 = jnp.maximum(h1, 0.0)
    ff = jnp.dot(h1.astype(jnp.bfloat16), ff2_w_ref[...],
                 preferred_element_type=jnp.float32) + ff2_b_ref[...]

    # ---- residual + LayerNorm 2 ----
    y2 = x1 + ff
    mu2 = jnp.mean(y2, axis=-1, keepdims=True)
    yc2 = y2 - mu2
    var2 = jnp.mean(yc2 * yc2, axis=-1, keepdims=True)
    x2 = yc2 * jax.lax.rsqrt(var2 + eps) * ln2_g_ref[...] + ln2_b_ref[...]

    o_ref[0] = x2.astype(o_ref.dtype)


def encoder_layer_pallas(x, lp, *, num_heads, eps=1e-5):
    """One post-norm transformer encoder layer. x: (B, S, H) f32."""
    B, S, H = x.shape
    F = lp["ff1_w"].shape[1]
    Dh = H // num_heads

    def full_spec(a):
        return pl.BlockSpec(a.shape, lambda b: (0,) * a.ndim)

    x_spec = pl.BlockSpec((1, S, H), lambda b: (b, 0, 0))

    flops = 2 * B * S * H * (3 * H)                       # qkv proj
    flops += 2 * B * num_heads * S * S * Dh * 2           # scores + attn@v
    flops += 2 * B * S * H * H                            # out proj
    flops += 2 * B * S * H * F * 2                        # ffn
    transcendentals = B * num_heads * S * S + 4 * B * S   # exp + rsqrt/rcp
    weight_bytes = 2 * (H * 3 * H + H * H + 2 * H * F)    # bf16 weights
    bytes_accessed = 2 * B * S * H * 4 + weight_bytes

    return pl.pallas_call(
        functools.partial(_encoder_layer_kernel, num_heads=num_heads, eps=eps),
        out_shape=jax.ShapeDtypeStruct((B, S, H), jnp.float32),
        grid=(B,),
        in_specs=[
            x_spec,
            full_spec(lp["in_w"]), full_spec(lp["in_b"]),
            full_spec(lp["out_w"]), full_spec(lp["out_b"]),
            full_spec(lp["ln1_g"]), full_spec(lp["ln1_b"]),
            full_spec(lp["ff1_w"]), full_spec(lp["ff1_b"]),
            full_spec(lp["ff2_w"]), full_spec(lp["ff2_b"]),
            full_spec(lp["ln2_g"]), full_spec(lp["ln2_b"]),
        ],
        out_specs=x_spec,
        compiler_params=pltpu.CompilerParams(
            dimension_semantics=("parallel",),
            # weights + (S,H) activation tiles stay well under v7x's 64 MiB;
            # raise the scoped default to be explicit about the budget.
            vmem_limit_bytes=48 * 1024 * 1024,
        ),
        cost_estimate=pl.CostEstimate(flops=flops,
                                      transcendentals=transcendentals,
                                      bytes_accessed=bytes_accessed),
    )(x,
      lp["in_w"], lp["in_b"], lp["out_w"], lp["out_b"],
      lp["ln1_g"], lp["ln1_b"],
      lp["ff1_w"], lp["ff1_b"], lp["ff2_w"], lp["ff2_b"],
      lp["ln2_g"], lp["ln2_b"])


# ---------------------------------------------------------------------------
# Row-tiled linear (point embedding / output head)
# ---------------------------------------------------------------------------

def _linear_kernel(x_ref, w_ref, b_ref, o_ref):
    y = jnp.dot(x_ref[...].astype(jnp.bfloat16), w_ref[...],
                preferred_element_type=jnp.float32)
    o_ref[...] = (y + b_ref[...]).astype(o_ref.dtype)


def _row_tile(M, target=128):
    """Largest row tile <= target that divides M and is 8-aligned; prefer >=2 tiles."""
    if M % 8 != 0:
        return M
    tm = min(target, M)
    tm -= tm % 8
    if tm <= 0:
        return M
    while M % tm:
        tm -= 8
    if tm == M and M >= 16 and (M // 2) % 8 == 0:
        tm = M // 2          # give the grid a parallel axis (2 TCs on v7x)
    return tm


def linear_pallas(x2d, w, b2):
    """y = x2d @ w + b.  x2d: (M, K) f32, w: (K, N) bf16, b2: (1, N) f32."""
    M, K = x2d.shape
    _, N = w.shape
    tm = _row_tile(M)
    grid = (M // tm,)
    ce = pl.CostEstimate(flops=2 * M * K * N, transcendentals=0,
                         bytes_accessed=4 * M * (K + N) + 2 * K * N)
    return pl.pallas_call(
        _linear_kernel,
        out_shape=jax.ShapeDtypeStruct((M, N), jnp.float32),
        grid=grid,
        in_specs=[
            pl.BlockSpec((tm, K), lambda i: (i, 0)),
            pl.BlockSpec((K, N), lambda i: (0, 0)),
            pl.BlockSpec((1, N), lambda i: (0, 0)),
        ],
        # TODO(synk): N = num_frames*2 (< 128 lanes) for the output head ->
        #             masked partial stores; negligible at this size.
        out_specs=pl.BlockSpec((tm, N), lambda i: (i, 0)),
        compiler_params=pltpu.CompilerParams(
            dimension_semantics=("parallel",)),
        cost_estimate=ce,
    )(x2d, w, b2)


# ---------------------------------------------------------------------------
# Parameter initialization (deterministic, synthetic)
# ---------------------------------------------------------------------------

def _w(key, shape, scale=0.02):
    # matmul weights stored bf16 (MXU operands); accumulation stays f32.
    return (jax.random.normal(key, shape, dtype=jnp.float32) * scale).astype(
        jnp.bfloat16)


def init_params(key, point_dim, hidden_dim, num_layers, num_frames, ffn_dim):
    H, F = hidden_dim, ffn_dim
    keys = jax.random.split(key, 4 + num_layers)
    params = {
        "emb_w": _w(keys[0], (point_dim, H)),
        "emb_b": jnp.zeros((1, H), jnp.float32),
        "out_w": _w(keys[1], (H, num_frames * 2)),
        "out_b": jnp.zeros((1, num_frames * 2), jnp.float32),
        "layers": [],
    }
    for l in range(num_layers):
        lk = jax.random.split(keys[4 + l], 4)
        params["layers"].append({
            # packed QKV in-projection: columns ordered [q | k | v]
            "in_w": _w(lk[0], (H, 3 * H)),
            "in_b": jnp.zeros((1, 3 * H), jnp.float32),
            "out_w": _w(lk[1], (H, H)),
            "out_b": jnp.zeros((1, H), jnp.float32),
            "ln1_g": jnp.ones((1, H), jnp.float32),
            "ln1_b": jnp.zeros((1, H), jnp.float32),
            "ff1_w": _w(lk[2], (H, F)),
            "ff1_b": jnp.zeros((1, F), jnp.float32),
            "ff2_w": _w(lk[3], (F, H)),
            "ff2_b": jnp.zeros((1, H), jnp.float32),
            "ln2_g": jnp.ones((1, H), jnp.float32),
            "ln2_b": jnp.zeros((1, H), jnp.float32),
        })
    return params


# ---------------------------------------------------------------------------
# Forward pass
# ---------------------------------------------------------------------------

def track_prediction_transformer_forward(params, P0, i0_g, zg, *,
                                          num_heads, num_frames):
    B, num_points, point_dim = P0.shape
    H = params["emb_w"].shape[1]
    assert i0_g.shape[0] == B and zg.shape[0] == B
    assert i0_g.shape[2] == H and zg.shape[2] == H

    # point embedding
    pe = linear_pallas(P0.reshape(B * num_points, point_dim),
                       params["emb_w"], params["emb_b"])
    pe = pe.reshape(B, num_points, H)

    # concat along sequence axis; the (S, B, H) permute in the reference is
    # equivalent to batch-first processing here (no masks, no dropout).
    x = jnp.concatenate([pe, i0_g, zg], axis=1)          # (B, S, H)

    # one fused Pallas kernel per encoder layer
    for lp in params["layers"]:
        x = encoder_layer_pallas(x, lp, num_heads=num_heads)

    # take first num_points of the sequence, project to tracks
    pts = x[:, :num_points, :].reshape(B * num_points, H)
    out = linear_pallas(pts, params["out_w"], params["out_b"])
    return out.reshape(B, num_points, num_frames, 2)


# ---------------------------------------------------------------------------
# Demo
# ---------------------------------------------------------------------------

if __name__ == "__main__":
    # small, consistent hyper-params (reference defaults are 768/6/8/16/2048)
    POINT_DIM = 2
    HIDDEN = 32
    NUM_LAYERS = 2
    NUM_HEADS = 4
    NUM_FRAMES = 4
    FFN_DIM = 64

    B = 2
    NUM_POINTS = 8
    LEN_I0G = 4
    LEN_ZG = 4

    key = jax.random.PRNGKey(0)
    kp, ki, kz, kw = jax.random.split(key, 4)
    P0 = jax.random.normal(kp, (B, NUM_POINTS, POINT_DIM), dtype=jnp.float32)
    i0_g = jax.random.normal(ki, (B, LEN_I0G, HIDDEN), dtype=jnp.float32)
    zg = jax.random.normal(kz, (B, LEN_ZG, HIDDEN), dtype=jnp.float32)

    params = init_params(kw, POINT_DIM, HIDDEN, NUM_LAYERS, NUM_FRAMES, FFN_DIM)

    fwd = jax.jit(functools.partial(track_prediction_transformer_forward,
                                    num_heads=NUM_HEADS, num_frames=NUM_FRAMES))
    out = fwd(params, P0, i0_g, zg)
    out = jax.block_until_ready(out)

    assert out.shape == (B, NUM_POINTS, NUM_FRAMES, 2)
    assert out.dtype == jnp.float32
    assert bool(jnp.all(jnp.isfinite(out)))
    print("KERNEL_OK")
</pallas_src>

<mosaic_0001>
module attributes {stable_mosaic.version = 11 : i64} {
  func.func @_linear_kernel(%arg0: i32, %arg1: memref<8x2xf32, #tpu.memory_space<vmem>>, %arg2: memref<2x32xbf16, #tpu.memory_space<vmem>>, %arg3: memref<1x32xf32, #tpu.memory_space<vmem>>, %arg4: memref<8x32xf32, #tpu.memory_space<vmem>>) attributes {dimension_semantics = [#tpu.dimension_semantics<parallel>], iteration_bounds = array<i64: 2>, scalar_prefetch = 0 : i64, scratch_operands = 0 : i64, tpu.core_type = #tpu.core_type<tc>, window_params = [{transform_indices = @transform_0, window_bounds = array<i64: 8, 2>}, {pipeline_mode = #tpu.pipeline_mode<synchronous>, transform_indices = @transform_1, window_bounds = array<i64: 2, 32>}, {pipeline_mode = #tpu.pipeline_mode<synchronous>, transform_indices = @transform_2, window_bounds = array<i64: 1, 32>}, {transform_indices = @transform_3, window_bounds = array<i64: 8, 32>}]} {
    %c0 = arith.constant 0 : index
    %c0_0 = arith.constant 0 : index
    %0 = vector.load %arg1[%c0, %c0_0] : memref<8x2xf32, #tpu.memory_space<vmem>>, vector<8x2xf32>
    %1 = arith.truncf %0 : vector<8x2xf32> to vector<8x2xbf16>
    %c0_1 = arith.constant 0 : index
    %c0_2 = arith.constant 0 : index
    %2 = vector.load %arg2[%c0_1, %c0_2] : memref<2x32xbf16, #tpu.memory_space<vmem>>, vector<2x32xbf16>
    %cst = arith.constant dense<0.000000e+00> : vector<8x32xf32>
    %3 = tpu.matmul %1, %2, %cst {dimension_numbers = #tpu.dot_dimension_numbers<[1], [0], [0], [1], [0, 0, 1, 1], [], []>} : vector<8x2xbf16>, vector<2x32xbf16>, vector<8x32xf32> -> vector<8x32xf32>
    %c0_3 = arith.constant 0 : index
    %c0_4 = arith.constant 0 : index
    %4 = vector.load %arg3[%c0_3, %c0_4] : memref<1x32xf32, #tpu.memory_space<vmem>>, vector<1x32xf32>
    %5 = vector.broadcast %4 : vector<1x32xf32> to vector<8x32xf32>
    %6 = arith.addf %3, %5 : vector<8x32xf32>
    %c0_5 = arith.constant 0 : index
    %c0_6 = arith.constant 0 : index
    %7 = vector.load %arg4[%c0_5, %c0_6] : memref<8x32xf32, #tpu.memory_space<vmem>>, vector<8x32xf32>
    tpu.vector_store %arg4[%c0_5, %c0_6], %6 {strides = array<i32>} : memref<8x32xf32, #tpu.memory_space<vmem>>, vector<8x32xf32>,
    return
  }
  func.func @transform_0(%arg0: i32) -> (i32, i32) {
    %c0_i32 = arith.constant 0 : i32
    %c0_i32_0 = arith.constant 0 : i32
    return %arg0, %c0_i32 : i32, i32
  }
  func.func @transform_1(%arg0: i32) -> (i32, i32) {
    %c0_i32 = arith.constant 0 : i32
    %c0_i32_0 = arith.constant 0 : i32
    %c0_i32_1 = arith.constant 0 : i32
    return %c0_i32, %c0_i32_0 : i32, i32
  }
  func.func @transform_2(%arg0: i32) -> (i32, i32) {
    %c0_i32 = arith.constant 0 : i32
    %c0_i32_0 = arith.constant 0 : i32
    %c0_i32_1 = arith.constant 0 : i32
    return %c0_i32, %c0_i32_0 : i32, i32
  }
  func.func @transform_3(%arg0: i32) -> (i32, i32) {
    %c0_i32 = arith.constant 0 : i32
    %c0_i32_0 = arith.constant 0 : i32
    return %arg0, %c0_i32 : i32, i32
  }
}

module attributes {stable_mosaic.version = 11 : i64} {
  func.func @_linear_kernel(%arg0: i32, %arg1: memref<8x32xf32, #tpu.memory_space<vmem>>, %arg2: memref<32x8xbf16, #tpu.memory_space<vmem>>, %arg3: memref<1x8xf32, #tpu.memory_space<vmem>>, %arg4: memref<8x8xf32, #tpu.memory_space<vmem>>) attributes {dimension_semantics = [#tpu.dimension_semantics<parallel>], iteration_bounds = array<i64: 2>, scalar_prefetch = 0 : i64, scratch_operands = 0 : i64, tpu.core_type = #tpu.core_type<tc>, window_params = [{transform_indices = @transform_0, window_bounds = array<i64: 8, 32>}, {pipeline_mode = #tpu.pipeline_mode<synchronous>, transform_indices = @transform_1, window_bounds = array<i64: 32, 8>}, {pipeline_mode = #tpu.pipeline_mode<synchronous>, transform_indices = @transform_2, window_bounds = array<i64: 1, 8>}, {transform_indices = @transform_3, window_bounds = array<i64: 8, 8>}]} {
    %c0 = arith.constant 0 : index
    %c0_0 = arith.constant 0 : index
    %0 = vector.load %arg1[%c0, %c0_0] : memref<8x32xf32, #tpu.memory_space<vmem>>, vector<8x32xf32>
    %1 = arith.truncf %0 : vector<8x32xf32> to vector<8x32xbf16>
    %c0_1 = arith.constant 0 : index
    %c0_2 = arith.constant 0 : index
    %2 = vector.load %arg2[%c0_1, %c0_2] : memref<32x8xbf16, #tpu.memory_space<vmem>>, vector<32x8xbf16>
    %cst = arith.constant dense<0.000000e+00> : vector<8x8xf32>
    %3 = tpu.matmul %1, %2, %cst {dimension_numbers = #tpu.dot_dimension_numbers<[1], [0], [0], [1], [0, 0, 1, 1], [], []>} : vector<8x32xbf16>, vector<32x8xbf16>, vector<8x8xf32> -> vector<8x8xf32>
    %c0_3 = arith.constant 0 : index
    %c0_4 = arith.constant 0 : index
    %4 = vector.load %arg3[%c0_3, %c0_4] : memref<1x8xf32, #tpu.memory_space<vmem>>, vector<1x8xf32>
    %5 = vector.broadcast %4 : vector<1x8xf32> to vector<8x8xf32>
    %6 = arith.addf %3, %5 : vector<8x8xf32>
    %c0_5 = arith.constant 0 : index
    %c0_6 = arith.constant 0 : index
    %7 = vector.load %arg4[%c0_5, %c0_6] : memref<8x8xf32, #tpu.memory_space<vmem>>, vector<8x8xf32>
    tpu.vector_store %arg4[%c0_5, %c0_6], %6 {strides = array<i32>} : memref<8x8xf32, #tpu.memory_space<vmem>>, vector<8x8xf32>,
    return
  }
  func.func @transform_0(%arg0: i32) -> (i32, i32) {
    %c0_i32 = arith.constant 0 : i32
    %c0_i32_0 = arith.constant 0 : i32
    return %arg0, %c0_i32 : i32, i32
  }
  func.func @transform_1(%arg0: i32) -> (i32, i32) {
    %c0_i32 = arith.constant 0 : i32
    %c0_i32_0 = arith.constant 0 : i32
    %c0_i32_1 = arith.constant 0 : i32
    return %c0_i32, %c0_i32_0 : i32, i32
  }
  func.func @transform_2(%arg0: i32) -> (i32, i32) {
    %c0_i32 = arith.constant 0 : i32
    %c0_i32_0 = arith.constant 0 : i32
    %c0_i32_1 = arith.constant 0 : i32
    return %c0_i32, %c0_i32_0 : i32, i32
  }
  func.func @transform_3(%arg0: i32) -> (i32, i32) {
    %c0_i32 = arith.constant 0 : i32
    %c0_i32_0 = arith.constant 0 : i32
    return %arg0, %c0_i32 : i32, i32
  }
}

module attributes {stable_mosaic.version = 11 : i64} {
  func.func @_encoder_layer_kernel(%arg0: i32, %arg1: memref<1x16x32xf32, #tpu.memory_space<vmem>>, %arg2: memref<32x96xbf16, #tpu.memory_space<vmem>>, %arg3: memref<1x96xf32, #tpu.memory_space<vmem>>, %arg4: memref<32x32xbf16, #tpu.memory_space<vmem>>, %arg5: memref<1x32xf32, #tpu.memory_space<vmem>>, %arg6: memref<1x32xf32, #tpu.memory_space<vmem>>, %arg7: memref<1x32xf32, #tpu.memory_space<vmem>>, %arg8: memref<32x64xbf16, #tpu.memory_space<vmem>>, %arg9: memref<1x64xf32, #tpu.memory_space<vmem>>, %arg10: memref<64x32xbf16, #tpu.memory_space<vmem>>, %arg11: memref<1x32xf32, #tpu.memory_space<vmem>>, %arg12: memref<1x32xf32, #tpu.memory_space<vmem>>, %arg13: memref<1x32xf32, #tpu.memory_space<vmem>>, %arg14: memref<1x16x32xf32, #tpu.memory_space<vmem>>) attributes {dimension_semantics = [#tpu.dimension_semantics<parallel>], iteration_bounds = array<i64: 2>, scalar_prefetch = 0 : i64, scratch_operands = 0 : i64, tpu.core_type = #tpu.core_type<tc>, window_params = [{transform_indices = @transform_0, window_bounds = array<i64: 1, 16, 32>}, {pipeline_mode = #tpu.pipeline_mode<synchronous>, transform_indices = @transform_1, window_bounds = array<i64: 32, 96>}, {pipeline_mode = #tpu.pipeline_mode<synchronous>, transform_indices = @transform_2, window_bounds = array<i64: 1, 96>}, {pipeline_mode = #tpu.pipeline_mode<synchronous>, transform_indices = @transform_3, window_bounds = array<i64: 32, 32>}, {pipeline_mode = #tpu.pipeline_mode<synchronous>, transform_indices = @transform_4, window_bounds = array<i64: 1, 32>}, {pipeline_mode = #tpu.pipeline_mode<synchronous>, transform_indices = @transform_5, window_bounds = array<i64: 1, 32>}, {pipeline_mode = #tpu.pipeline_mode<synchronous>, transform_indices = @transform_6, window_bounds = array<i64: 1, 32>}, {pipeline_mode = #tpu.pipeline_mode<synchronous>, transform_indices = @transform_7, window_bounds = array<i64: 32, 64>}, {pipeline_mode = #tpu.pipeline_mode<synchronous>, transform_indices = @transform_8, window_bounds = array<i64: 1, 64>}, {pipeline_mode = #tpu.pipeline_mode<synchronous>, transform_indices = @transform_9, window_bounds = array<i64: 64, 32>}, {pipeline_mode = #tpu.pipeline_mode<synchronous>, transform_indices = @transform_10, window_bounds = array<i64: 1, 32>}, {pipeline_mode = #tpu.pipeline_mode<synchronous>, transform_indices = @transform_11, window_bounds = array<i64: 1, 32>}, {pipeline_mode = #tpu.pipeline_mode<synchronous>, transform_indices = @transform_12, window_bounds = array<i64: 1, 32>}, {transform_indices = @transform_13, window_bounds = array<i64: 1, 16, 32>}]} {
    %c0 = arith.constant 0 : index
    %c0_0 = arith.constant 0 : index
    %c0_1 = arith.constant 0 : index
    %0 = vector.load %arg1[%c0, %c0_0, %c0_1] : memref<1x16x32xf32, #tpu.memory_space<vmem>>, vector<1x16x32xf32>
    %1 = vector.shape_cast %0 : vector<1x16x32xf32> to vector<16x32xf32>
    %2 = arith.truncf %1 : vector<16x32xf32> to vector<16x32xbf16>
    %c0_2 = arith.constant 0 : index
    %c0_3 = arith.constant 0 : index
    %3 = vector.load %arg2[%c0_2, %c0_3] : memref<32x96xbf16, #tpu.memory_space<vmem>>, vector<32x96xbf16>
    %cst = arith.constant dense<0.000000e+00> : vector<16x96xf32>
    %4 = tpu.matmul %2, %3, %cst {dimension_numbers = #tpu.dot_dimension_numbers<[1], [0], [0], [1], [0, 0, 1, 1], [], []>} : vector<16x32xbf16>, vector<32x96xbf16>, vector<16x96xf32> -> vector<16x96xf32>
    %c0_4 = arith.constant 0 : index
    %c0_5 = arith.constant 0 : index
    %5 = vector.load %arg3[%c0_4, %c0_5] : memref<1x96xf32, #tpu.memory_space<vmem>>, vector<1x96xf32>
    %6 = vector.broadcast %5 : vector<1x96xf32> to vector<16x96xf32>
    %7 = arith.addf %4, %6 : vector<16x96xf32>
    %8 = vector.extract_strided_slice %7 {offsets = [0, 0], sizes = [16, 32], strides = [1, 1]} : vector<16x96xf32> to vector<16x32xf32>
    %9 = vector.extract_strided_slice %7 {offsets = [0, 32], sizes = [16, 32], strides = [1, 1]} : vector<16x96xf32> to vector<16x32xf32>
    %10 = vector.extract_strided_slice %7 {offsets = [0, 64], sizes = [16, 32], strides = [1, 1]} : vector<16x96xf32> to vector<16x32xf32>
    %c0_6 = arith.constant 0 : index
    %c0_7 = arith.constant 0 : index
    %11 = vector.load %arg4[%c0_6, %c0_7] : memref<32x32xbf16, #tpu.memory_space<vmem>>, vector<32x32xbf16>
    %cst_8 = arith.constant 0.000000e+00 : f32
    %12 = vector.broadcast %cst_8 : f32 to vector<16x32xf32>
    %13 = vector.extract_strided_slice %8 {offsets = [0, 0], sizes = [16, 8], strides = [1, 1]} : vector<16x32xf32> to vector<16x8xf32>
    %14 = arith.truncf %13 : vector<16x8xf32> to vector<16x8xbf16>
    %15 = vector.extract_strided_slice %9 {offsets = [0, 0], sizes = [16, 8], strides = [1, 1]} : vector<16x32xf32> to vector<16x8xf32>
    %16 = arith.truncf %15 : vector<16x8xf32> to vector<16x8xbf16>
    %17 = vector.extract_strided_slice %10 {offsets = [0, 0], sizes = [16, 8], strides = [1, 1]} : vector<16x32xf32> to vector<16x8xf32>
    %18 = arith.truncf %17 : vector<16x8xf32> to vector<16x8xbf16>
    %19 = tpu.transpose %16, [1, 0] : vector<16x8xbf16> -> vector<8x16xbf16>
    %cst_9 = arith.constant dense<0.000000e+00> : vector<16x16xf32>
    %20 = tpu.matmul %14, %19, %cst_9 {dimension_numbers = #tpu.dot_dimension_numbers<[1], [0], [0], [1], [0, 0, 1, 1], [], []>} : vector<16x8xbf16>, vector<8x16xbf16>, vector<16x16xf32> -> vector<16x16xf32>
    %cst_10 = arith.constant 0.353553385 : f32
    %21 = vector.broadcast %cst_10 : f32 to vector<16x16xf32>
    %22 = arith.mulf %20, %21 : vector<16x16xf32>
    %cst_11 = arith.constant dense<0xFF800000> : vector<16xf32>
    %23 = vector.multi_reduction <maximumf>, %22, %cst_11 [1] : vector<16x16xf32> to vector<16xf32>
    %24 = vector.shape_cast %23 : vector<16xf32> to vector<16x1xf32>
    %25 = vector.broadcast %24 : vector<16x1xf32> to vector<16x16xf32>
    %26 = arith.subf %22, %25 : vector<16x16xf32>
    %27 = math.exp %26 : vector<16x16xf32>
    %cst_12 = arith.constant dense<0.000000e+00> : vector<16xf32>
    %28 = vector.multi_reduction <add>, %27, %cst_12 [1] : vector<16x16xf32> to vector<16xf32>
    %29 = vector.shape_cast %28 : vector<16xf32> to vector<16x1xf32>
    %30 = tpu.reciprocal %29 {approx = true} : vector<16x1xf32> -> vector<16x1xf32>
    %31 = vector.broadcast %30 : vector<16x1xf32> to vector<16x16xf32>
    %32 = arith.mulf %27, %31 : vector<16x16xf32>
    %33 = arith.truncf %32 : vector<16x16xf32> to vector<16x16xbf16>
    %cst_13 = arith.constant dense<0.000000e+00> : vector<16x8xf32>
    %34 = tpu.matmul %33, %18, %cst_13 {dimension_numbers = #tpu.dot_dimension_numbers<[1], [0], [0], [1], [0, 0, 1, 1], [], []>} : vector<16x16xbf16>, vector<16x8xbf16>, vector<16x8xf32> -> vector<16x8xf32>
    %35 = arith.truncf %34 : vector<16x8xf32> to vector<16x8xbf16>
    %36 = vector.extract_strided_slice %11 {offsets = [0, 0], sizes = [8, 32], strides = [1, 1]} : vector<32x32xbf16> to vector<8x32xbf16>
    %cst_14 = arith.constant dense<0.000000e+00> : vector<16x32xf32>
    %37 = tpu.matmul %35, %36, %cst_14 {dimension_numbers = #tpu.dot_dimension_numbers<[1], [0], [0], [1], [0, 0, 1, 1], [], []>} : vector<16x8xbf16>, vector<8x32xbf16>, vector<16x32xf32> -> vector<16x32xf32>
    %38 = arith.addf %12, %37 : vector<16x32xf32>
    %39 = vector.extract_strided_slice %8 {offsets = [0, 8], sizes = [16, 8], strides = [1, 1]} : vector<16x32xf32> to vector<16x8xf32>
    %40 = arith.truncf %39 : vector<16x8xf32> to vector<16x8xbf16>
    %41 = vector.extract_strided_slice %9 {offsets = [0, 8], sizes = [16, 8], strides = [1, 1]} : vector<16x32xf32> to vector<16x8xf32>
    %42 = arith.truncf %41 : vector<16x8xf32> to vector<16x8xbf16>
    %43 = vector.extract_strided_slice %10 {offsets = [0, 8], sizes = [16, 8], strides = [1, 1]} : vector<16x32xf32> to vector<16x8xf32>
    %44 = arith.truncf %43 : vector<16x8xf32> to vector<16x8xbf16>
    %45 = tpu.transpose %42, [1, 0] : vector<16x8xbf16> -> vector<8x16xbf16>
    %cst_15 = arith.constant dense<0.000000e+00> : vector<16x16xf32>
    %46 = tpu.matmul %40, %45, %cst_15 {dimension_numbers = #tpu.dot_dimension_numbers<[1], [0], [0], [1], [0, 0, 1, 1], [], []>} : vector<16x8xbf16>, vector<8x16xbf16>, vector<16x16xf32> -> vector<16x16xf32>
    %cst_16 = arith.constant 0.353553385 : f32
    %47 = vector.broadcast %cst_16 : f32 to vector<16x16xf32>
    %48 = arith.mulf %46, %47 : vector<16x16xf32>
    %cst_17 = arith.constant dense<0xFF800000> : vector<16xf32>
    %49 = vector.multi_reduction <maximumf>, %48, %cst_17 [1] : vector<16x16xf32> to vector<16xf32>
    %50 = vector.shape_cast %49 : vector<16xf32> to vector<16x1xf32>
    %51 = vector.broadcast %50 : vector<16x1xf32> to vector<16x16xf32>
    %52 = arith.subf %48, %51 : vector<16x16xf32>
    %53 = math.exp %52 : vector<16x16xf32>
    %cst_18 = arith.constant dense<0.000000e+00> : vector<16xf32>
    %54 = vector.multi_reduction <add>, %53, %cst_18 [1] : vector<16x16xf32> to vector<16xf32>
    %55 = vector.shape_cast %54 : vector<16xf32> to vector<16x1xf32>
    %56 = tpu.reciprocal %55 {approx = true} : vector<16x1xf32> -> vector<16x1xf32>
    %57 = vector.broadcast %56 : vector<16x1xf32> to vector<16x16xf32>
    %58 = arith.mulf %53, %57 : vector<16x16xf32>
    %59 = arith.truncf %58 : vector<16x16xf32> to vector<16x16xbf16>
    %cst_19 = arith.constant dense<0.000000e+00> : vector<16x8xf32>
    %60 = tpu.matmul %59, %44, %cst_19 {dimension_numbers = #tpu.dot_dimension_numbers<[1], [0], [0], [1], [0, 0, 1, 1], [], []>} : vector<16x16xbf16>, vector<16x8xbf16>, vector<16x8xf32> -> vector<16x8xf32>
    %61 = arith.truncf %60 : vector<16x8xf32> to vector<16x8xbf16>
    %62 = vector.extract_strided_slice %11 {offsets = [8, 0], sizes = [8, 32], strides = [1, 1]} : vector<32x32xbf16> to vector<8x32xbf16>
    %cst_20 = arith.constant dense<0.000000e+00> : vector<16x32xf32>
    %63 = tpu.matmul %61, %62, %cst_20 {dimension_numbers = #tpu.dot_dimension_numbers<[1], [0], [0], [1], [0, 0, 1, 1], [], []>} : vector<16x8xbf16>, vector<8x32xbf16>, vector<16x32xf32> -> vector<16x32xf32>
    %64 = arith.addf %38, %63 : vector<16x32xf32>
    %65 = vector.extract_strided_slice %8 {offsets = [0, 16], sizes = [16, 8], strides = [1, 1]} : vector<16x32xf32> to vector<16x8xf32>
    %66 = arith.truncf %65 : vector<16x8xf32> to vector<16x8xbf16>
    %67 = vector.extract_strided_slice %9 {offsets = [0, 16], sizes = [16, 8], strides = [1, 1]} : vector<16x32xf32> to vector<16x8xf32>
    %68 = arith.truncf %67 : vector<16x8xf32> to vector<16x8xbf16>
    %69 = vector.extract_strided_slice %10 {offsets = [0, 16], sizes = [16, 8], strides = [1, 1]} : vector<16x32xf32> to vector<16x8xf32>
    %70 = arith.truncf %69 : vector<16x8xf32> to vector<16x8xbf16>
    %71 = tpu.transpose %68, [1, 0] : vector<16x8xbf16> -> vector<8x16xbf16>
    %cst_21 = arith.constant dense<0.000000e+00> : vector<16x16xf32>
    %72 = tpu.matmul %66, %71, %cst_21 {dimension_numbers = #tpu.dot_dimension_numbers<[1], [0], [0], [1], [0, 0, 1, 1], [], []>} : vector<16x8xbf16>, vector<8x16xbf16>, vector<16x16xf32> -> vector<16x16xf32>
    %cst_22 = arith.constant 0.353553385 : f32
    %73 = vector.broadcast %cst_22 : f32 to vector<16x16xf32>
    %74 = arith.mulf %72, %73 : vector<16x16xf32>
    %cst_23 = arith.constant dense<0xFF800000> : vector<16xf32>
    %75 = vector.multi_reduction <maximumf>, %74, %cst_23 [1] : vector<16x16xf32> to vector<16xf32>
    %76 = vector.shape_cast %75 : vector<16xf32> to vector<16x1xf32>
    %77 = vector.broadcast %76 : vector<16x1xf32> to vector<16x16xf32>
    %78 = arith.subf %74, %77 : vector<16x16xf32>
    %79 = math.exp %78 : vector<16x16xf32>
    %cst_24 = arith.constant dense<0.000000e+00> : vector<16xf32>
    %80 = vector.multi_reduction <add>, %79, %cst_24 [1] : vector<16x16xf32> to vector<16xf32>
    %81 = vector.shape_cast %80 : vector<16xf32> to vector<16x1xf32>
    %82 = tpu.reciprocal %81 {approx = true} : vector<16x1xf32> -> vector<16x1xf32>
    %83 = vector.broadcast %82 : vector<16x1xf32> to vector<16x16xf32>
    %84 = arith.mulf %79, %83 : vector<16x16xf32>
    %85 = arith.truncf %84 : vector<16x16xf32> to vector<16x16xbf16>
    %cst_25 = arith.constant dense<0.000000e+00> : vector<16x8xf32>
    %86 = tpu.matmul %85, %70, %cst_25 {dimension_numbers = #tpu.dot_dimension_numbers<[1], [0], [0], [1], [0, 0, 1, 1], [], []>} : vector<16x16xbf16>, vector<16x8xbf16>, vector<16x8xf32> -> vector<16x8xf32>
    %87 = arith.truncf %86 : vector<16x8xf32> to vector<16x8xbf16>
    %88 = vector.extract_strided_slice %11 {offsets = [16, 0], sizes = [8, 32], strides = [1, 1]} : vector<32x32xbf16> to vector<8x32xbf16>
    %cst_26 = arith.constant dense<0.000000e+00> : vector<16x32xf32>
    %89 = tpu.matmul %87, %88, %cst_26 {dimension_numbers = #tpu.dot_dimension_numbers<[1], [0], [0], [1], [0, 0, 1, 1], [], []>} : vector<16x8xbf16>, vector<8x32xbf16>, vector<16x32xf32> -> vector<16x32xf32>
    %90 = arith.addf %64, %89 : vector<16x32xf32>
    %91 = vector.extract_strided_slice %8 {offsets = [0, 24], sizes = [16, 8], strides = [1, 1]} : vector<16x32xf32> to vector<16x8xf32>
    %92 = arith.truncf %91 : vector<16x8xf32> to vector<16x8xbf16>
    %93 = vector.extract_strided_slice %9 {offsets = [0, 24], sizes = [16, 8], strides = [1, 1]} : vector<16x32xf32> to vector<16x8xf32>
    %94 = arith.truncf %93 : vector<16x8xf32> to vector<16x8xbf16>
    %95 = vector.extract_strided_slice %10 {offsets = [0, 24], sizes = [16, 8], strides = [1, 1]} : vector<16x32xf32> to vector<16x8xf32>
    %96 = arith.truncf %95 : vector<16x8xf32> to vector<16x8xbf16>
    %97 = tpu.transpose %94, [1, 0] : vector<16x8xbf16> -> vector<8x16xbf16>
    %cst_27 = arith.constant dense<0.000000e+00> : vector<16x16xf32>
    %98 = tpu.matmul %92, %97, %cst_27 {dimension_numbers = #tpu.dot_dimension_numbers<[1], [0], [0], [1], [0, 0, 1, 1], [], []>} : vector<16x8xbf16>, vector<8x16xbf16>, vector<16x16xf32> -> vector<16x16xf32>
    %cst_28 = arith.constant 0.353553385 : f32
    %99 = vector.broadcast %cst_28 : f32 to vector<16x16xf32>
    %100 = arith.mulf %98, %99 : vector<16x16xf32>
    %cst_29 = arith.constant dense<0xFF800000> : vector<16xf32>
    %101 = vector.multi_reduction <maximumf>, %100, %cst_29 [1] : vector<16x16xf32> to vector<16xf32>
    %102 = vector.shape_cast %101 : vector<16xf32> to vector<16x1xf32>
    %103 = vector.broadcast %102 : vector<16x1xf32> to vector<16x16xf32>
    %104 = arith.subf %100, %103 : vector<16x16xf32>
    %105 = math.exp %104 : vector<16x16xf32>
    %cst_30 = arith.constant dense<0.000000e+00> : vector<16xf32>
    %106 = vector.multi_reduction <add>, %105, %cst_30 [1] : vector<16x16xf32> to vector<16xf32>
    %107 = vector.shape_cast %106 : vector<16xf32> to vector<16x1xf32>
    %108 = tpu.reciprocal %107 {approx = true} : vector<16x1xf32> -> vector<16x1xf32>
    %109 = vector.broadcast %108 : vector<16x1xf32> to vector<16x16xf32>
    %110 = arith.mulf %105, %109 : vector<16x16xf32>
    %111 = arith.truncf %110 : vector<16x16xf32> to vector<16x16xbf16>
    %cst_31 = arith.constant dense<0.000000e+00> : vector<16x8xf32>
    %112 = tpu.matmul %111, %96, %cst_31 {dimension_numbers = #tpu.dot_dimension_numbers<[1], [0], [0], [1], [0, 0, 1, 1], [], []>} : vector<16x16xbf16>, vector<16x8xbf16>, vector<16x8xf32> -> vector<16x8xf32>
    %113 = arith.truncf %112 : vector<16x8xf32> to vector<16x8xbf16>
    %114 = vector.extract_strided_slice %11 {offsets = [24, 0], sizes = [8, 32], strides = [1, 1]} : vector<32x32xbf16> to vector<8x32xbf16>
    %cst_32 = arith.constant dense<0.000000e+00> : vector<16x32xf32>
    %115 = tpu.matmul %113, %114, %cst_32 {dimension_numbers = #tpu.dot_dimension_numbers<[1], [0], [0], [1], [0, 0, 1, 1], [], []>} : vector<16x8xbf16>, vector<8x32xbf16>, vector<16x32xf32> -> vector<16x32xf32>
    %116 = arith.addf %90, %115 : vector<16x32xf32>
    %c0_33 = arith.constant 0 : index
    %c0_34 = arith.constant 0 : index
    %117 = vector.load %arg5[%c0_33, %c0_34] : memref<1x32xf32, #tpu.memory_space<vmem>>, vector<1x32xf32>
    %118 = vector.broadcast %117 : vector<1x32xf32> to vector<16x32xf32>
    %119 = arith.addf %116, %118 : vector<16x32xf32>
    %120 = arith.addf %1, %119 : vector<16x32xf32>
    %cst_35 = arith.constant dense<0.000000e+00> : vector<16xf32>
    %121 = vector.multi_reduction <add>, %120, %cst_35 [1] : vector<16x32xf32> to vector<16xf32>
    %122 = vector.shape_cast %121 : vector<16xf32> to vector<16x1xf32>
    %cst_36 = arith.constant 3.200000e+01 : f32
    %123 = vector.broadcast %cst_36 : f32 to vector<16x1xf32>
    %124 = arith.divf %122, %123 : vector<16x1xf32>
    %125 = vector.broadcast %124 : vector<16x1xf32> to vector<16x32xf32>
    %126 = arith.subf %120, %125 : vector<16x32xf32>
    %127 = arith.mulf %126, %126 : vector<16x32xf32>
    %cst_37 = arith.constant dense<0.000000e+00> : vector<16xf32>
    %128 = vector.multi_reduction <add>, %127, %cst_37 [1] : vector<16x32xf32> to vector<16xf32>
    %129 = vector.shape_cast %128 : vector<16xf32> to vector<16x1xf32>
    %cst_38 = arith.constant 3.200000e+01 : f32
    %130 = vector.broadcast %cst_38 : f32 to vector<16x1xf32>
    %131 = arith.divf %129, %130 : vector<16x1xf32>
    %cst_39 = arith.constant 9.99999974E-6 : f32
    %132 = vector.broadcast %cst_39 : f32 to vector<16x1xf32>
    %133 = arith.addf %131, %132 : vector<16x1xf32>
    %134 = math.rsqrt %133 : vector<16x1xf32>
    %135 = vector.broadcast %134 : vector<16x1xf32> to vector<16x32xf32>
    %136 = arith.mulf %126, %135 : vector<16x32xf32>
    %c0_40 = arith.constant 0 : index
    %c0_41 = arith.constant 0 : index
    %137 = vector.load %arg6[%c0_40, %c0_41] : memref<1x32xf32, #tpu.memory_space<vmem>>, vector<1x32xf32>
    %138 = vector.broadcast %137 : vector<1x32xf32> to vector<16x32xf32>
    %139 = arith.mulf %136, %138 : vector<16x32xf32>
    %c0_42 = arith.constant 0 : index
    %c0_43 = arith.constant 0 : index
    %140 = vector.load %arg7[%c0_42, %c0_43] : memref<1x32xf32, #tpu.memory_space<vmem>>, vector<1x32xf32>
    %141 = vector.broadcast %140 : vector<1x32xf32> to vector<16x32xf32>
    %142 = arith.addf %139, %141 : vector<16x32xf32>
    %143 = arith.truncf %142 : vector<16x32xf32> to vector<16x32xbf16>
    %c0_44 = arith.constant 0 : index
    %c0_45 = arith.constant 0 : index
    %144 = vector.load %arg8[%c0_44, %c0_45] : memref<32x64xbf16, #tpu.memory_space<vmem>>, vector<32x64xbf16>
    %cst_46 = arith.constant dense<0.000000e+00> : vector<16x64xf32>
    %145 = tpu.matmul %143, %144, %cst_46 {dimension_numbers = #tpu.dot_dimension_numbers<[1], [0], [0], [1], [0, 0, 1, 1], [], []>} : vector<16x32xbf16>, vector<32x64xbf16>, vector<16x64xf32> -> vector<16x64xf32>
    %c0_47 = arith.constant 0 : index
    %c0_48 = arith.constant 0 : index
    %146 = vector.load %arg9[%c0_47, %c0_48] : memref<1x64xf32, #tpu.memory_space<vmem>>, vector<1x64xf32>
    %147 = vector.broadcast %146 : vector<1x64xf32> to vector<16x64xf32>
    %148 = arith.addf %145, %147 : vector<16x64xf32>
    %cst_49 = arith.constant 0.000000e+00 : f32
    %149 = vector.broadcast %cst_49 : f32 to vector<16x64xf32>
    %150 = arith.maximumf %148, %149 : vector<16x64xf32>
    %151 = arith.truncf %150 : vector<16x64xf32> to vector<16x64xbf16>
    %c0_50 = arith.constant 0 : index
    %c0_51 = arith.constant 0 : index
    %152 = vector.load %arg10[%c0_50, %c0_51] : memref<64x32xbf16, #tpu.memory_space<vmem>>, vector<64x32xbf16>
    %cst_52 = arith.constant dense<0.000000e+00> : vector<16x32xf32>
    %153 = tpu.matmul %151, %152, %cst_52 {dimension_numbers = #tpu.dot_dimension_numbers<[1], [0], [0], [1], [0, 0, 1, 1], [], []>} : vector<16x64xbf16>, vector<64x32xbf16>, vector<16x32xf32> -> vector<16x32xf32>
    %c0_53 = arith.constant 0 : index
    %c0_54 = arith.constant 0 : index
    %154 = vector.load %arg11[%c0_53, %c0_54] : memref<1x32xf32, #tpu.memory_space<vmem>>, vector<1x32xf32>
    %155 = vector.broadcast %154 : vector<1x32xf32> to vector<16x32xf32>
    %156 = arith.addf %153, %155 : vector<16x32xf32>
    %157 = arith.addf %142, %156 : vector<16x32xf32>
    %cst_55 = arith.constant dense<0.000000e+00> : vector<16xf32>
    %158 = vector.multi_reduction <add>, %157, %cst_55 [1] : vector<16x32xf32> to vector<16xf32>
    %159 = vector.shape_cast %158 : vector<16xf32> to vector<16x1xf32>
    %cst_56 = arith.constant 3.200000e+01 : f32
    %160 = vector.broadcast %cst_56 : f32 to vector<16x1xf32>
    %161 = arith.divf %159, %160 : vector<16x1xf32>
    %162 = vector.broadcast %161 : vector<16x1xf32> to vector<16x32xf32>
    %163 = arith.subf %157, %162 : vector<16x32xf32>
    %164 = arith.mulf %163, %163 : vector<16x32xf32>
    %cst_57 = arith.constant dense<0.000000e+00> : vector<16xf32>
    %165 = vector.multi_reduction <add>, %164, %cst_57 [1] : vector<16x32xf32> to vector<16xf32>
    %166 = vector.shape_cast %165 : vector<16xf32> to vector<16x1xf32>
    %cst_58 = arith.constant 3.200000e+01 : f32
    %167 = vector.broadcast %cst_58 : f32 to vector<16x1xf32>
    %168 = arith.divf %166, %167 : vector<16x1xf32>
    %cst_59 = arith.constant 9.99999974E-6 : f32
    %169 = vector.broadcast %cst_59 : f32 to vector<16x1xf32>
    %170 = arith.addf %168, %169 : vector<16x1xf32>
    %171 = math.rsqrt %170 : vector<16x1xf32>
    %172 = vector.broadcast %171 : vector<16x1xf32> to vector<16x32xf32>
    %173 = arith.mulf %163, %172 : vector<16x32xf32>
    %c0_60 = arith.constant 0 : index
    %c0_61 = arith.constant 0 : index
    %174 = vector.load %arg12[%c0_60, %c0_61] : memref<1x32xf32, #tpu.memory_space<vmem>>, vector<1x32xf32>
    %175 = vector.broadcast %174 : vector<1x32xf32> to vector<16x32xf32>
    %176 = arith.mulf %173, %175 : vector<16x32xf32>
    %c0_62 = arith.constant 0 : index
    %c0_63 = arith.constant 0 : index
    %177 = vector.load %arg13[%c0_62, %c0_63] : memref<1x32xf32, #tpu.memory_space<vmem>>, vector<1x32xf32>
    %178 = vector.broadcast %177 : vector<1x32xf32> to vector<16x32xf32>
    %179 = arith.addf %176, %178 : vector<16x32xf32>
    %c0_64 = arith.constant 0 : index
    %c0_65 = arith.constant 0 : index
    %c0_66 = arith.constant 0 : index
    %180 = vector.load %arg14[%c0_64, %c0_65, %c0_66] : memref<1x16x32xf32, #tpu.memory_space<vmem>>, vector<1x16x32xf32>
    %181 = vector.shape_cast %180 : vector<1x16x32xf32> to vector<16x32xf32>
    %182 = vector.shape_cast %179 : vector<16x32xf32> to vector<1x16x32xf32>
    tpu.vector_store %arg14[%c0_64, %c0_65, %c0_66], %182 {strides = array<i32>} : memref<1x16x32xf32, #tpu.memory_space<vmem>>, vector<1x16x32xf32>,
    return
  }
  func.func @transform_0(%arg0: i32) -> (i32, i32, i32) {
    %c0_i32 = arith.constant 0 : i32
    %c0_i32_0 = arith.constant 0 : i32
    %c0_i32_1 = arith.constant 0 : i32
    return %arg0, %c0_i32, %c0_i32_0 : i32, i32, i32
  }
  func.func @transform_1(%arg0: i32) -> (i32, i32) {
    %c0_i32 = arith.constant 0 : i32
    %c0_i32_0 = arith.constant 0 : i32
    %c0_i32_1 = arith.constant 0 : i32
    return %c0_i32, %c0_i32_0 : i32, i32
  }
  func.func @transform_2(%arg0: i32) -> (i32, i32) {
    %c0_i32 = arith.constant 0 : i32
    %c0_i32_0 = arith.constant 0 : i32
    %c0_i32_1 = arith.constant 0 : i32
    return %c0_i32, %c0_i32_0 : i32, i32
  }
  func.func @transform_3(%arg0: i32) -> (i32, i32) {
    %c0_i32 = arith.constant 0 : i32
    %c0_i32_0 = arith.constant 0 : i32
    %c0_i32_1 = arith.constant 0 : i32
    return %c0_i32, %c0_i32_0 : i32, i32
  }
  func.func @transform_4(%arg0: i32) -> (i32, i32) {
    %c0_i32 = arith.constant 0 : i32
    %c0_i32_0 = arith.constant 0 : i32
    %c0_i32_1 = arith.constant 0 : i32
    return %c0_i32, %c0_i32_0 : i32, i32
  }
  func.func @transform_5(%arg0: i32) -> (i32, i32) {
    %c0_i32 = arith.constant 0 : i32
    %c0_i32_0 = arith.constant 0 : i32
    %c0_i32_1 = arith.constant 0 : i32
    return %c0_i32, %c0_i32_0 : i32, i32
  }
  func.func @transform_6(%arg0: i32) -> (i32, i32) {
    %c0_i32 = arith.constant 0 : i32
    %c0_i32_0 = arith.constant 0 : i32
    %c0_i32_1 = arith.constant 0 : i32
    return %c0_i32, %c0_i32_0 : i32, i32
  }
  func.func @transform_7(%arg0: i32) -> (i32, i32) {
    %c0_i32 = arith.constant 0 : i32
    %c0_i32_0 = arith.constant 0 : i32
    %c0_i32_1 = arith.constant 0 : i32
    return %c0_i32, %c0_i32_0 : i32, i32
  }
  func.func @transform_8(%arg0: i32) -> (i32, i32) {
    %c0_i32 = arith.constant 0 : i32
    %c0_i32_0 = arith.constant 0 : i32
    %c0_i32_1 = arith.constant 0 : i32
    return %c0_i32, %c0_i32_0 : i32, i32
  }
  func.func @transform_9(%arg0: i32) -> (i32, i32) {
    %c0_i32 = arith.constant 0 : i32
    %c0_i32_0 = arith.constant 0 : i32
    %c0_i32_1 = arith.constant 0 : i32
    return %c0_i32, %c0_i32_0 : i32, i32
  }
  func.func @transform_10(%arg0: i32) -> (i32, i32) {
    %c0_i32 = arith.constant 0 : i32
    %c0_i32_0 = arith.constant 0 : i32
    %c0_i32_1 = arith.constant 0 : i32
    return %c0_i32, %c0_i32_0 : i32, i32
  }
  func.func @transform_11(%arg0: i32) -> (i32, i32) {
    %c0_i32 = arith.constant 0 : i32
    %c0_i32_0 = arith.constant 0 : i32
    %c0_i32_1 = arith.constant 0 : i32
    return %c0_i32, %c0_i32_0 : i32, i32
  }
  func.func @transform_12(%arg0: i32) -> (i32, i32) {
    %c0_i32 = arith.constant 0 : i32
    %c0_i32_0 = arith.constant 0 : i32
    %c0_i32_1 = arith.constant 0 : i32
    return %c0_i32, %c0_i32_0 : i32, i32
  }
  func.func @transform_13(%arg0: i32) -> (i32, i32, i32) {
    %c0_i32 = arith.constant 0 : i32
    %c0_i32_0 = arith.constant 0 : i32
    %c0_i32_1 = arith.constant 0 : i32
    return %arg0, %c0_i32, %c0_i32_0 : i32, i32, i32
  }
}

</mosaic_0001>

<bundles_post_ra>
// kernel: track_prediction_transformer_forward.7
= control target key start
LH: loop header
LB: loop body
LE: loop exit
PB: predicated region body
PF: predicated region fallthrough
CT: control target
= control target key end

     0   :  { %s357_s12 = smov 0   ;;  %s383_s0 = inlined_call_operand.vmem [shape: f32[16,32], index: 0, kind: input, shape index: {}]   ;;  %s384_s1 = inlined_call_operand.vmem [shape: bf16[32,8], index: 1, kind: input, shape index: {}]   ;;  %s385_s2 = inlined_call_operand.vmem [shape: f32[1,8], index: 2, kind: input, shape index: {}]   ;;  %s386_s3 = inlined_call_operand.vmem [shape: f32[16,8], index: 3, kind: output, shape index: {}]  }
   0x1 LB: > { %s291_s13 = sadd.s32 4294967295, %s333_s12   ;;  %p295_p0 = scmp.ge.s32.totalorder %s333_s12, 1  ;;  %s333_s12 = sphi %s357_s12, %s13_s12  }
   0x2   : > { %p136_p1 = scmp.lt.s32.totalorder %s333_s12, 3 }
   0x4   : > { %p137_p2 = pnand %p295_p0, %p136_p1 }
   0x5   : > { %v325_v0 = vld [vmem:[%s384_s1] sm:$0xff] (!%p137_p2)   ;;  %v335_v1 = vmov (!%p137_p2), 0.0   ;;  %v326_v2 = vld [vmem:[%s384_s1 + $0x8] sm:$0xff] (!%p137_p2)   ;;  %vm336_vm0 = vmmov (!%p137_p2), 0   ;;  %p158_p3 = scmp.lt.s32.totalorder (!%p137_p2), %s291_s13, 1  ;;  %vm192_vm1 = vcmask (!%p137_p2), 261120  }
   0x6   : > { %140 = sbr.rel (%p137_p2) target bundleno = 234 (0xea), region = 32  ;;  %307 = vmatprep.subr.bf16.mxu0 (!%p137_p2), %v335_v1  ;;  %311 = vmatprep.mubr.msk.bf16.mxu0 (!%p137_p2), %vm336_vm0, %v335_v1  ;;  %v298_v5 = vld [vmem:[%s385_s2] ss:$0 sm:$0xff] (!%p137_p2)  ;;  %vm236_vm2 = vcmask (!%p137_p2), 64512  }
   0x7   : > { %308 = vmatpush3.bf16.msra.mxu0 (!%p137_p2), %v325_v0 }
   0x8   : > { %309 = vmatprep.subr.bf16.mxu0 (!%p137_p2), %v335_v1 }
   0xb   : > { %310 = vmatpush3.bf16.msra.mxu0 (!%p137_p2), %v326_v2 }
   0xd   : > { %s388_s13 = smov (!%p158_p3, %s291_s13), 1 }
   0xe   : > { %s296_s18 = sshll.u32 %s388_s13, 3 }
   0xf   : > { %s161_s21 = scalar_lea.vmem %s383_s0, %s296_s18  ;;  %s165_s26 = scalar_lea.vmem %s386_s3, %s296_s18 }
  0x10   : > { %v167_v3 = vld [vmem:[%s161_s21] sm:$0xff] }
  0x11   : > { %v168_v4 = vpack.c.bf16 %v167_v3, %v167_v3 }
  0x13   : > { %312 = vmatmul.mubr.msk.bf16.vlgmr.msra.gmra.mrb[0].mxu0 %vm192_vm1, %v168_v4 }
  0xe6   : > { %v230_v6 = vpop.f32.mrb[0].mxu0 }
  0xe7   : > { %v231_v7 = vadd.f32 %v298_v5, %v230_v6  ;;  %v313_v8 = vpop.f32.mrb[1].mxu0 }
  0xe8   : > { %v233_v9 = vpop.f32.mrb[2].mxu0 }
  0xe9   : > { %237 = vst.msk [vmem:[%s165_s26] sm:$0xff] %vm236_vm2, %v231_v7  ;;  %v314_v10 = vpop.f32.mrb[3].mxu0 }
  0xea PF: > { %s13_s12 = sadd.s32 1, %s333_s12  }
  0xeb   : > { %p10_p4 = scmp.ge.s32.totalorder %s13_s12, 4  }
  0xed   :  { %12 = sbr.rel (!%p10_p4) target bundleno = 1 (0x1), region = 62 }

// kernel: track_prediction_transformer_forward.4
= control target key start
LH: loop header
LB: loop body
LE: loop exit
PB: predicated region body
PF: predicated region fallthrough
CT: control target
= control target key end

     0   :  { %s339_s12 = smov 0   ;;  %s362_s0 = inlined_call_operand.vmem [shape: f32[16,2], index: 0, kind: input, shape index: {}]   ;;  %s363_s1 = inlined_call_operand.vmem [shape: bf16[2,32], index: 1, kind: input, shape index: {}]   ;;  %s364_s2 = inlined_call_operand.vmem [shape: f32[1,32], index: 2, kind: input, shape index: {}]   ;;  %s365_s3 = inlined_call_operand.vmem [shape: f32[16,32], index: 3, kind: output, shape index: {}]  }
   0x1 LB: > { %s280_s13 = sadd.s32 4294967295, %s315_s12   ;;  %p284_p0 = scmp.ge.s32.totalorder %s315_s12, 1  ;;  %s315_s12 = sphi %s339_s12, %s13_s12  }
   0x2   : > { %p136_p1 = scmp.lt.s32.totalorder %s315_s12, 3 }
   0x4   : > { %p137_p2 = pnand %p284_p0, %p136_p1 }
   0x5   : > { %v169_v0 = vld [vmem:[%s363_s1] sm:$0x1] (!%p137_p2)  ;;  %vm181_vm0 = vcmask (!%p137_p2), 1040384   ;;  %p158_p3 = scmp.lt.s32.totalorder (!%p137_p2), %s280_s13, 1  ;;  %v317_v1 = vmov (!%p137_p2), 0.0   ;;  %vm318_vm1 = vmmov (!%p137_p2), 0  }
   0x6   : > { %140 = sbr.rel (%p137_p2) target bundleno = 234 (0xea), region = 32  ;;  %293 = vmatprep.subr.bf16.mxu0 (!%p137_p2), %v317_v1  ;;  %v183_v2 = vsel (!%p137_p2), %vm181_vm0, %v169_v0, 0  ;;  %295 = vmatprep.mubr.msk.bf16.mxu0 (!%p137_p2), %vm318_vm1, %v317_v1  ;;  %vm177_vm2 = vcmask (!%p137_p2), 15360   ;;  %v287_v5 = vld [vmem:[%s364_s2] ss:$0 sm:$0xff] (!%p137_p2)  ;;  %vm225_vm3 = vcmask (!%p137_p2), 261120  }
   0x7   : > { %294 = vmatpush3.bf16.msra.mxu0 (!%p137_p2), %v183_v2 }
   0xd   : > { %s367_s13 = smov (!%p158_p3, %s280_s13), 1 }
   0xe   : > { %s285_s16 = sshll.u32 %s367_s13, 3 }
   0xf   : > { %s161_s19 = scalar_lea.vmem %s362_s0, %s285_s16  ;;  %s165_s24 = scalar_lea.vmem %s365_s3, %s285_s16 }
  0x10   : > { %v167_v3 = vld [vmem:[%s161_s19] sm:$0xff] }
  0x11   : > { %v168_v4 = vpack.c.bf16 %v167_v3, %v167_v3 }
  0x13   : > { %296 = vmatmul.mubr.msk.bf16.vlgmr.msra.gmra.mrb[0].mxu0 %vm177_vm2, %v168_v4 }
  0xe6   : > { %v219_v6 = vpop.f32.mrb[0].mxu0 }
  0xe7   : > { %v220_v7 = vadd.f32 %v287_v5, %v219_v6  ;;  %v297_v8 = vpop.f32.mrb[1].mxu0 }
  0xe8   : > { %v222_v9 = vpop.f32.mrb[2].mxu0 }
  0xe9   : > { %226 = vst.msk [vmem:[%s165_s24] sm:$0xff] %vm225_vm3, %v220_v7  ;;  %v298_v10 = vpop.f32.mrb[3].mxu0 }
  0xea PF: > { %s13_s12 = sadd.s32 1, %s315_s12  }
  0xeb   : > { %p10_p4 = scmp.ge.s32.totalorder %s13_s12, 4  }
  0xed   :  { %12 = sbr.rel (!%p10_p4) target bundleno = 1 (0x1), region = 62 }

// kernel: track_prediction_transformer_forward.5
= control target key start
LH: loop header
LB: loop body
LE: loop exit
PB: predicated region body
PF: predicated region fallthrough
CT: control target
= control target key end

     0   :  { %s1861_s25 = smov 0   ;;  %s2071_s0 = inlined_call_operand.vmem [shape: f32[2,16,32], index: 0, kind: input, shape index: {}]   ;;  %s2072_s1 = inlined_call_operand.vmem [shape: bf16[32,96], index: 1, kind: input, shape index: {}]   ;;  %s2073_s2 = inlined_call_operand.vmem [shape: f32[1,96], index: 2, kind: input, shape index: {}]   ;;  %s2074_s3 = inlined_call_operand.vmem [shape: bf16[32,32], index: 3, kind: input, shape index: {}]   ;;  %s2075_s4 = inlined_call_operand.vmem [shape: f32[1,32], index: 4, kind: input, shape index: {}]   ;;  %s2076_s5 = inlined_call_operand.vmem [shape: f32[1,32], index: 5, kind: input, shape index: {}]   ;;  %s2077_s6 = inlined_call_operand.vmem [shape: f32[1,32], index: 6, kind: input, shape index: {}]   ;;  %s2078_s7 = inlined_call_operand.vmem [shape: bf16[32,64], index: 7, kind: input, shape index: {}]   ;;  %s2079_s8 = inlined_call_operand.vmem [shape: f32[1,64], index: 8, kind: input, shape index: {}]   ;;  %s2080_s9 = inlined_call_operand.vmem [shape: bf16[64,32], index: 9, kind: input, shape index: {}]   ;;  %s2081_s10 = inlined_call_operand.vmem [shape: f32[1,32], index: 10, kind: input, shape index: {}]   ;;  %s2082_s11 = inlined_call_operand.vmem [shape: f32[1,32], index: 11, kind: input, shape index: {}]   ;;  %s2083_s12 = inlined_call_operand.vmem [shape: f32[1,32], index: 12, kind: input, shape index: {}]   ;;  %s2084_s13 = inlined_call_operand.vmem [shape: f32[2,16,32], index: 13, kind: output, shape index: {}]  }
   0x1 LB: > { %s1522_s26 = sadd.s32 4294967295, %s1776_s25   ;;  %p1526_p0 = scmp.ge.s32.totalorder %s1776_s25, 1  ;;  %s1776_s25 = sphi %s1861_s25, %s23_s25  }
   0x2   : > { %p387_p1 = scmp.lt.s32.totalorder %s1776_s25, 3 }
   0x4   : > { %p388_p2 = pnand %p1526_p0, %p387_p1 }
   0x5   : > { %v1722_v0 = vld [vmem:[%s2072_s1] sm:$0xff] (!%p388_p2)   ;;  %v1778_v1 = vmov (!%p388_p2), 0.0   ;;  %v1723_v2 = vld [vmem:[%s2072_s1 + $0x8] sm:$0xff] (!%p388_p2)   ;;  %vm1779_vm0 = vmmov (!%p388_p2), 0   ;;  %p431_p3 = scmp.lt.s32.totalorder (!%p388_p2), %s1522_s26, 1  ;;  %vm468_vm1 = vcmask (!%p388_p2), 261120  }
   0x6   : > { %391 = sbr.rel (%p388_p2) target bundleno = 3705 (0xe79), region = 72  ;;  %1601 = vmatprep.subr.bf16.mxu1 (!%p388_p2), %v1778_v1  ;;  %1615 = vmatprep.subr.bf16.mxu0 (!%p388_p2), %v1778_v1  ;;  %v1531_v6 = vld [vmem:[%s2073_s2] ss:$0 sm:$0xff] (!%p388_p2)  ;;  %s1780_s20 = smov (!%p388_p2), 120   ;;  %vm521_vm2 = vcmask (!%p388_p2), 64512   ;;  %vm571_vm3 = vcmask (!%p388_p2), 130048  }
   0x7   : > { %1602 = vmatpush3.bf16.msra.mxu1 (!%p388_p2), %v1722_v0  ;;  %1605 = vmatprep.mubr.msk.bf16.mxu1 (!%p388_p2), %vm1779_vm0, %v1778_v1  ;;  %s1781_s21 = smov (!%p388_p2), 96   ;;  %s1782_s22 = smov (!%p388_p2), 88   ;;  %vm770_vm4 = vcmask (!%p388_p2), 1043456   ;;  %vm1374_vm5 = vcmask (!%p388_p2), 523264  }
   0x8   : > { %1603 = vmatprep.subr.bf16.mxu1 (!%p388_p2), %v1778_v1  ;;  %1617 = vmatprep.mubr.msk.bf16.mxu0 (!%p388_p2), %vm1779_vm0, %v1778_v1  ;;  %s1783_s23 = smov (!%p388_p2), 56   ;;  %s1784_s24 = smov (!%p388_p2), 64  }
   0x9   : > { %s1785_s27 = smov (!%p388_p2), 80   ;;  %s1786_s28 = smov (!%p388_p2), 112  }
   0xa   : > { %s1788_s18 = smov (!%p388_p2), 48   ;;  %s1789_s19 = smov (!%p388_p2), 104  }
   0xb   : > { %1604 = vmatpush3.bf16.msra.mxu1 (!%p388_p2), %v1723_v2 }
   0xc   : > { %1609 = vmatprep.subr.bf16.mxu1 (!%p388_p2), %v1778_v1 }
   0xd   : > { %s2086_s26 = smov (!%p431_p3, %s1522_s26), 1 }
   0xe   : > { %s1564_s14 = sshll.u32 %s2086_s26, 4 }
   0xf   : > { %s435_s17 = scalar_lea.vmem %s2071_s0, %s1564_s14 }
  0x10   : > { %v1891_v3 = vld [vmem:[%s435_s17] sm:$0xff]  ;;  %v1893_v4 = vld [vmem:[%s435_s17 + $0x8] sm:$0xff]  ;;  %s1787_s17 = smov 72  }
  0x11   : > { %v444_v5 = vpack.c.bf16 %v1893_v4, %v1891_v3 }
  0x13   : > { %1606 = vmatmul.mubr.msk.bf16.vlgmr.msra.gmra.mrb[0].mxu1 %vm468_vm1, %v444_v5 }
  0x14   : > { %1611 = vmatprep.mubr.msk.bf16.mxu1 %vm1779_vm0, %v1778_v1 }
  0xe6   : > { %v506_v7 = vpop.f32.mrb[0].mxu1 }
  0xe7   : > { %v1607_v8 = vpop.f32.mrb[1].mxu1  ;;  %v507_v10 = vadd.f32 %v1531_v6, %v506_v7 }
  0xe8   : > { %v509_v9 = vpop.f32.mrb[2].mxu1 }
  0xe9   : > { %v510_v11 = vadd.f32 %v1531_v6, %v509_v9  ;;  %v1608_v12 = vpop.f32.mrb[3].mxu1 }
  0xea   : > { %v514_v12 = vld [vmem:[%s2074_s3 + $0x4] sm:$0xf] }
  0xeb   : > { %v1903_v13 = vpack.c.bf16 %v510_v11, %v507_v10  ;;  %v513_v10 = vld [vmem:[%s2074_s3] sm:$0xf] }
  0xec   : > { %v819_v11 = vsel %vm770_vm4, %v513_v10, 0 }
  0xed   : > { %643 = vrot.lane.b32.xlu1 %v1903_v13, %s1780_s20  ;;  %519 = vrot.lane.b32.xlu0 %v1903_v13, %s1781_s21 }
  0xf1   : > { %645 = vrot.lane.b32.xlu0 %v1903_v13, %s1782_s22  ;;  %s1790_s22 = smov 40  }
 0x15f   : > { %v520_v14 = vpop.permute.xlu0 %519  ;;  %v644_v18 = vpop.permute.xlu1 %643 }
 0x160   : > { %v526_v15 = vsel %vm521_vm2, %v520_v14, 0  ;;  %v772_v14 = vsel %vm770_vm4, %v514_v12, 0 }
 0x161   : > { %1610 = vmatpush3.bf16.xpose.msra.mxu1 %v526_v15 }
 0x162   : > { %1621 = vmatprep.subr.bf16.mxu1 %v1778_v1 }
 0x163   : > { %v646_v16 = vpop.permute.xlu0 %645 }
 0x164   : > { %v651_v17 = vsel %vm521_vm2, %v646_v16, 0 }
 0x168   : > { %1612 = vmatmul.mubr.msk.bf16.vlgmr.msra.gmra.mrb[4].mxu1 %vm521_vm2, %v1903_v13 }
 0x169   : > { %1622 = vmatpush3.bf16.xpose.msra.mxu1 %v651_v17  ;;  %1623 = vmatprep.mubr.msk.bf16.mxu1 %vm1779_vm0, %v1778_v1 }
 0x16a   : > { %1633 = vmatprep.subr.bf16.mxu1 %v1778_v1 }
 0x170   : > { %1624 = vmatmul.mubr.msk.bf16.vlgmr.msra.gmra.mrb[8].mxu1 %vm521_vm2, %v644_v18 }
 0x171   : > { %1635 = vmatprep.mubr.msk.bf16.mxu1 %vm1779_vm0, %v1778_v1  ;;  %1634 = vmatpush3.bf16.msra.mxu1 %v772_v14 }
 0x172   : > { %1645 = vmatprep.subr.bf16.mxu1 %v1778_v1 }
 0x23b   : > { %v562_v19 = vpop.f32.mrb[4].mxu1 }
 0x23c   : > { %v569_v20 = vmul.f32 0.35355338, %v562_v19  ;;  %v1613_v21 = vpop.f32.mrb[5].mxu1 }
 0x23d   : > { %v565_v22 = vpop.f32.mrb[6].mxu1 }
 0x23e   : > { %v570_v23 = vmul.f32 0.35355338, %v565_v22  ;;  %v1614_v24 = vpop.f32.mrb[7].mxu1  ;;  %v572_v25 = vsel %vm571_vm3, %v569_v20, -inf }
 0x23f   : > { %573 = vmax.xlane.f32.xlu1 %v572_v25 }
 0x240   : > { %v575_v26 = vsel %vm571_vm3, %v570_v23, -inf }
 0x241   : > { %576 = vmax.xlane.f32.xlu0 %v575_v26 }
 0x243   : > { %v687_v27 = vpop.f32.mrb[8].mxu1 }
 0x244   : > { %v694_v28 = vmul.f32 0.35355338, %v687_v27  ;;  %v1625_v29 = vpop.f32.mrb[9].mxu1 }
 0x245   : > { %v690_v30 = vpop.f32.mrb[10].mxu1 }
 0x246   : > { %v695_v31 = vmul.f32 0.35355338, %v690_v30  ;;  %v1626_v32 = vpop.f32.mrb[11].mxu1  ;;  %v696_v33 = vsel %vm571_vm3, %v694_v28, -inf }
 0x247   : > { %697 = vmax.xlane.f32.xlu0 %v696_v33 }
 0x248   : > { %v699_v34 = vsel %vm571_vm3, %v695_v31, -inf }
 0x249   : > { %700 = vmax.xlane.f32.xlu1 %v699_v34 }
 0x2cc   : > { %v574_v35 = vpop.xlane.xlu1 %573 }
 0x2cd   : > { %v578_v36 = vsub.f32 %v569_v20, %v574_v35 }
 0x2ce   : > { %v577_v37 = vpop.xlane.xlu0 %576 }
 0x2cf   : > { %v580_v38 = vmul.f32 1.442695, %v578_v36  ;;  %v579_v39 = vsub.f32 %v570_v23, %v577_v37 }
 0x2d1   : > { %1730 = vpow2.f32 %v580_v38  ;;  %v582_v40 = vmul.f32 1.442695, %v579_v39 }
 0x2d3   : > { %1732 = vpow2.f32 %v582_v40 }
 0x2d4   : > { %v698_v41 = vpop.xlane.xlu0 %697 }
 0x2d5   : > { %v702_v42 = vsub.f32 %v694_v28, %v698_v41 }
 0x2d6   : > { %v701_v43 = vpop.xlane.xlu1 %700 }
 0x2d7   : > { %v704_v44 = vmul.f32 1.442695, %v702_v42  ;;  %v703_v45 = vsub.f32 %v695_v31, %v701_v43 }
 0x2d9   : > { %1734 = vpow2.f32 %v704_v44  ;;  %v706_v46 = vmul.f32 1.442695, %v703_v45 }
 0x2db   : > { %v1731_v47 = vpop.eup %1730  ;;  %1736 = vpow2.f32 %v706_v46 }
 0x2dc   : > { %v584_v48 = vsel %vm571_vm3, %v1731_v47, 0.0 }
 0x2dd   : > { %v1733_v49 = vpop.eup %1732  ;;  %585 = vadd.xlane.f32.xlu0 %v584_v48 }
 0x2de   : > { %v587_v50 = vsel %vm571_vm3, %v1733_v49, 0.0 }
 0x2df   : > { %588 = vadd.xlane.f32.xlu1 %v587_v50 }
 0x2e3   : > { %v1735_v51 = vpop.eup %1734 }
 0x2e4   : > { %v708_v52 = vsel %vm571_vm3, %v1735_v51, 0.0 }
 0x2e5   : > { %v1737_v53 = vpop.eup %1736  ;;  %709 = vadd.xlane.f32.xlu0 %v708_v52 }
 0x2e6   : > { %v711_v54 = vsel %vm571_vm3, %v1737_v53, 0.0 }
 0x2e7   : > { %712 = vadd.xlane.f32.xlu1 %v711_v54 }
 0x2f8   : > { %719 = vrot.lane.b32.xlu1 %v1903_v13, %s1783_s23 }
 0x2fb   : > { %595 = vrot.lane.b32.xlu0 %v1903_v13, %s1784_s24 }
 0x2fc   : > { %864 = vrot.lane.b32.xlu1 %v1903_v13, %s1785_s27  ;;  %s440_s27 = scalar_lea.vmem %s2084_s13, %s1564_s14 }
 0x2ff   : > { %862 = vrot.lane.b32.xlu0 %v1903_v13, %s1786_s28 }
 0x36a   : > { %v586_v55 = vpop.xlane.xlu0 %585 }
 0x36b   : > { %1738 = vrcp.f32 %v586_v55 }
 0x36c   : > { %v589_v56 = vpop.xlane.xlu1 %588 }
 0x36d   : > { %1740 = vrcp.f32 %v589_v56 }
 0x372   : > { %v710_v57 = vpop.xlane.xlu0 %709 }
 0x373   : > { %1742 = vrcp.f32 %v710_v57 }
 0x374   : > { %v713_v58 = vpop.xlane.xlu1 %712 }
 0x375   : > { %v1739_v59 = vpop.eup %1738  ;;  %1744 = vrcp.f32 %v713_v58 }
 0x376   : > { %v596_v60 = vpop.permute.xlu0 %595  ;;  %v592_v62 = vmul.f32 %v1739_v59, %v1731_v47 }
 0x377   : > { %v1741_v61 = vpop.eup %1740  ;;  %1616 = vmatpush3.bf16.msra.mxu0 %v596_v60 }
 0x378   : > { %1627 = vmatprep.subr.bf16.mxu0 %v1778_v1  ;;  %v593_v63 = vmul.f32 %v1741_v61, %v1733_v49  ;;  %v720_v2 = vpop.permute.xlu1 %719 }
 0x37a   : > { %v594_v0 = vpack.c.bf16 %v593_v63, %v592_v62  ;;  %v863_v27 = vpop.permute.xlu0 %862 }
 0x37c   : > { %1618 = vmatmul.mubr.msk.bf16.vlgmr.msra.gmra.mrb[0].mxu0 %vm571_vm3, %v594_v0  ;;  %v865_v22 = vpop.permute.xlu1 %864 }
 0x37d   : > { %v1743_v5 = vpop.eup %1742  ;;  %1628 = vmatpush3.bf16.msra.mxu0 %v720_v2  ;;  %1629 = vmatprep.mubr.msk.bf16.mxu0 %vm1779_vm0, %v1778_v1  ;;  %v870_v26 = vsel %vm521_vm2, %v865_v22, 0 }
 0x37e   : > { %1639 = vmatprep.subr.bf16.mxu0 %v1778_v1  ;;  %v716_v7 = vmul.f32 %v1743_v5, %v1735_v51 }
 0x37f   : > { %v1745_v6 = vpop.eup %1744 }
 0x380   : > { %v717_v8 = vmul.f32 %v1745_v6, %v1737_v53  ;;  %v515_v6 = vld [vmem:[%s2074_s3 + $0x8] sm:$0xf] }
 0x382   : > { %v718_v9 = vpack.c.bf16 %v717_v8, %v716_v7  ;;  %v990_v7 = vsel %vm770_vm4, %v515_v6, 0 }
 0x384   : > { %1630 = vmatmul.mubr.msk.bf16.vlgmr.msra.gmra.mrb[4].mxu0 %vm571_vm3, %v718_v9 }
 0x385   : > { %1641 = vmatprep.mubr.msk.bf16.mxu0 %vm1779_vm0, %v1778_v1  ;;  %1640 = vmatpush3.bf16.msra.mxu0 %v819_v11 }
 0x386   : > { %1651 = vmatprep.subr.bf16.mxu0 %v1778_v1 }
 0x44f   : > { %v635_v15 = vpop.f32.mrb[0].mxu0 }
 0x450   : > { %v1619_v16 = vpop.f32.mrb[1].mxu0 }
 0x451   : > { %v638_v17 = vpop.f32.mrb[2].mxu0 }
 0x452   : > { %v642_v18 = vpack.c.bf16 %v638_v17, %v635_v15  ;;  %v1620_v19 = vpop.f32.mrb[3].mxu0 }
 0x454   : > { %1642 = vmatmul.mubr.msk.bf16.vlgmr.msra.gmra.mrb[8].mxu0 %vm521_vm2, %v642_v18 }
 0x455   : > { %1653 = vmatprep.mubr.msk.bf16.mxu0 %vm1779_vm0, %v1778_v1 }
 0x457   : > { %v759_v20 = vpop.f32.mrb[4].mxu0 }
 0x458   : > { %v1631_v21 = vpop.f32.mrb[5].mxu0 }
 0x459   : > { %v762_v23 = vpop.f32.mrb[6].mxu0 }
 0x45a   : > { %v766_v24 = vpack.c.bf16 %v762_v23, %v759_v20  ;;  %v1632_v25 = vpop.f32.mrb[7].mxu0 }
 0x45c   : > { %1636 = vmatmul.mubr.msk.bf16.vlgmr.msra.gmra.mrb[12].mxu1 %vm521_vm2, %v766_v24 }
 0x45d   : > { %1646 = vmatpush3.bf16.xpose.msra.mxu1 %v870_v26  ;;  %1647 = vmatprep.mubr.msk.bf16.mxu1 %vm1779_vm0, %v1778_v1 }
 0x45e   : > { %1657 = vmatprep.subr.bf16.mxu1 %v1778_v1 }
 0x464   : > { %1648 = vmatmul.mubr.msk.bf16.vlgmr.msra.gmra.mrb[16].mxu1 %vm521_vm2, %v863_v27 }
 0x465   : > { %1659 = vmatprep.mubr.msk.bf16.mxu1 %vm1779_vm0, %v1778_v1  ;;  %1658 = vmatpush3.bf16.msra.mxu1 %v990_v7 }
 0x466   : > { %1669 = vmatprep.subr.bf16.mxu1 %v1778_v1 }
 0x527   : > { %v855_v28 = vpop.f32.mrb[8].mxu0 }
 0x528   : > { %v1643_v29 = vpop.f32.mrb[9].mxu0 }
 0x529   : > { %v858_v30 = vpop.f32.mrb[10].mxu0 }
 0x52a   : > { %v1644_v31 = vpop.f32.mrb[11].mxu0 }
 0x52f   : > { %v808_v32 = vpop.f32.mrb[12].mxu1 }
 0x530   : > { %v1960_v33 = vadd.f32 %v855_v28, %v808_v32  ;;  %v1637_v34 = vpop.f32.mrb[13].mxu1 }
 0x531   : > { %v811_v35 = vpop.f32.mrb[14].mxu1 }
 0x532   : > { %v1962_v36 = vadd.f32 %v858_v30, %v811_v35  ;;  %v1638_v37 = vpop.f32.mrb[15].mxu1 }
 0x537   : > { %v906_v38 = vpop.f32.mrb[16].mxu1 }
 0x538   : > { %v913_v39 = vmul.f32 0.35355338, %v906_v38  ;;  %v1649_v40 = vpop.f32.mrb[17].mxu1 }
 0x539   : > { %v909_v41 = vpop.f32.mrb[18].mxu1 }
 0x53a   : > { %v914_v42 = vmul.f32 0.35355338, %v909_v41  ;;  %v1650_v43 = vpop.f32.mrb[19].mxu1  ;;  %v915_v44 = vsel %vm571_vm3, %v913_v39, -inf }
 0x53b   : > { %916 = vmax.xlane.f32.xlu1 %v915_v44 }
 0x53c   : > { %v918_v45 = vsel %vm571_vm3, %v914_v42, -inf }
 0x53d   : > { %919 = vmax.xlane.f32.xlu0 %v918_v45 }
 0x5c8   : > { %v917_v46 = vpop.xlane.xlu1 %916 }
 0x5c9   : > { %v921_v47 = vsub.f32 %v913_v39, %v917_v46 }
 0x5ca   : > { %v920_v48 = vpop.xlane.xlu0 %919 }
 0x5cb   : > { %v923_v49 = vmul.f32 1.442695, %v921_v47  ;;  %v922_v50 = vsub.f32 %v914_v42, %v920_v48 }
 0x5cd   : > { %1746 = vpow2.f32 %v923_v49  ;;  %v925_v51 = vmul.f32 1.442695, %v922_v50 }
 0x5cf   : > { %1748 = vpow2.f32 %v925_v51 }
 0x5d7   : > { %v1747_v52 = vpop.eup %1746 }
 0x5d8   : > { %v927_v53 = vsel %vm571_vm3, %v1747_v52, 0.0 }
 0x5d9   : > { %v1749_v54 = vpop.eup %1748  ;;  %928 = vadd.xlane.f32.xlu0 %v927_v53  ;;  %v1547_v53 = vld [vmem:[%s2075_s4] ss:$0 sm:$0xff] }
 0x5da   : > { %v930_v55 = vsel %vm571_vm3, %v1749_v54, 0.0 }
 0x5db   : > { %931 = vadd.xlane.f32.xlu1 %v930_v55 }
 0x5ec   : > { %1037 = vrot.lane.b32.xlu1 %v1903_v13, %s1787_s17 }
 0x5ef   : > { %938 = vrot.lane.b32.xlu0 %v1903_v13, %s1788_s18 }
 0x5f0   : > { %1035 = vrot.lane.b32.xlu1 %v1903_v13, %s1789_s19 }
 0x666   : > { %v929_v56 = vpop.xlane.xlu0 %928 }
 0x667   : > { %1750 = vrcp.f32 %v929_v56 }
 0x668   : > { %v932_v57 = vpop.xlane.xlu1 %931 }
 0x669   : > { %1752 = vrcp.f32 %v932_v57 }
 0x66a   : > { %v939_v58 = vpop.permute.xlu0 %938 }
 0x66b   : > { %1652 = vmatpush3.bf16.msra.mxu0 %v939_v58 }
 0x66c   : > { %1663 = vmatprep.subr.bf16.mxu0 %v1778_v1  ;;  %v1038_v63 = vpop.permute.xlu1 %1037 }
 0x66d   : > { %v1043_v2 = vsel %vm521_vm2, %v1038_v63, 0 }
 0x670   : > { %v1036_v5 = vpop.permute.xlu1 %1035 }
 0x671   : > { %v1751_v59 = vpop.eup %1750 }
 0x672   : > { %v935_v61 = vmul.f32 %v1751_v59, %v1747_v52 }
 0x673   : > { %v1753_v60 = vpop.eup %1752 }
 0x674   : > { %v936_v62 = vmul.f32 %v1753_v60, %v1749_v54 }
 0x676   : > { %v937_v0 = vpack.c.bf16 %v936_v62, %v935_v61 }
 0x678   : > { %1654 = vmatmul.mubr.msk.bf16.vlgmr.msra.gmra.mrb[12].mxu0 %vm571_vm3, %v937_v0 }
 0x679   : > { %1664 = vmatpush3.bf16.xpose.msra.mxu0 %v1043_v2  ;;  %1665 = vmatprep.mubr.msk.bf16.mxu0 %vm1779_vm0, %v1778_v1 }
 0x67a   : > { %1675 = vmatprep.subr.bf16.mxu0 %v1778_v1 }
 0x680   : > { %1666 = vmatmul.mubr.msk.bf16.vlgmr.msra.gmra.mrb[16].mxu0 %vm521_vm2, %v1036_v5 }
 0x681   : > { %1677 = vmatprep.mubr.msk.bf16.mxu0 %vm1779_vm0, %v1778_v1 }
 0x74b   : > { %v978_v8 = vpop.f32.mrb[12].mxu0 }
 0x74c   : > { %v1655_v9 = vpop.f32.mrb[13].mxu0 }
 0x74d   : > { %v981_v10 = vpop.f32.mrb[14].mxu0 }
 0x74e   : > { %v985_v11 = vpack.c.bf16 %v981_v10, %v978_v8  ;;  %v1656_v12 = vpop.f32.mrb[15].mxu0 }
 0x750   : > { %1660 = vmatmul.mubr.msk.bf16.vlgmr.msra.gmra.mrb[20].mxu1 %vm521_vm2, %v985_v11 }
 0x751   : > { %1671 = vmatprep.mubr.msk.bf16.mxu1 %vm1779_vm0, %v1778_v1 }
 0x753   : > { %v1079_v14 = vpop.f32.mrb[16].mxu0 }
 0x754   : > { %v1086_v15 = vmul.f32 0.35355338, %v1079_v14  ;;  %v1667_v16 = vpop.f32.mrb[17].mxu0  ;;  %v1725_v14 = vld [vmem:[%s2078_s7 + $0x8] sm:$0xff]  }
 0x755   : > { %v1082_v17 = vpop.f32.mrb[18].mxu0  ;;  %v1727_v16 = vld [vmem:[%s2080_s9 + $0x8] sm:$0xff]  }
 0x756   : > { %v1087_v18 = vmul.f32 0.35355338, %v1082_v17  ;;  %v1668_v19 = vpop.f32.mrb[19].mxu0  ;;  %v1088_v20 = vsel %vm571_vm3, %v1086_v15, -inf }
 0x757   : > { %1089 = vmax.xlane.f32.xlu0 %v1088_v20 }
 0x758   : > { %v1091_v21 = vsel %vm571_vm3, %v1087_v18, -inf }
 0x759   : > { %1092 = vmax.xlane.f32.xlu1 %v1091_v21 }
 0x76a   : > { %1111 = vrot.lane.b32.xlu1 %v1903_v13, %s1790_s22  ;;  %v516_v13 = vld [vmem:[%s2074_s3 + $0xc] sm:$0xf] }
 0x76b   : > { %v1163_v34 = vsel %vm770_vm4, %v516_v13, 0 }
 0x76c   : > { %1676 = vmatpush3.bf16.msra.mxu0 %v1163_v34  ;;  %v1728_v34 = vld [vmem:[%s2080_s9 + $0x10] sm:$0xff]  }
 0x76d   : > { %1689 = vmatprep.subr.bf16.mxu0 %v1778_v1 }
 0x7e4   : > { %v1090_v22 = vpop.xlane.xlu0 %1089 }
 0x7e5   : > { %v1094_v23 = vsub.f32 %v1086_v15, %v1090_v22  ;;  %v1726_v15 = vld [vmem:[%s2080_s9] sm:$0xff]  }
 0x7e6   : > { %v1093_v24 = vpop.xlane.xlu1 %1092 }
 0x7e7   : > { %v1096_v25 = vmul.f32 1.442695, %v1094_v23  ;;  %v1095_v26 = vsub.f32 %v1087_v18, %v1093_v24 }
 0x7e9   : > { %1754 = vpow2.f32 %v1096_v25  ;;  %v1098_v27 = vmul.f32 1.442695, %v1095_v26  ;;  %v1548_v25 = vld [vmem:[%s2076_s5] ss:$0 sm:$0xff] }
 0x7ea   : > { %v1112_v28 = vpop.permute.xlu1 %1111 }
 0x7eb   : > { %1756 = vpow2.f32 %v1098_v27  ;;  %1670 = vmatpush3.bf16.msra.mxu1 %v1112_v28 }
 0x7ec   : > { %1681 = vmatprep.subr.bf16.mxu1 %v1778_v1 }
 0x7f3   : > { %v1755_v29 = vpop.eup %1754 }
 0x7f4   : > { %v1100_v30 = vsel %vm571_vm3, %v1755_v29, 0.0 }
 0x7f5   : > { %v1757_v31 = vpop.eup %1756  ;;  %1101 = vadd.xlane.f32.xlu0 %v1100_v30 }
 0x7f6   : > { %v1103_v32 = vsel %vm571_vm3, %v1757_v31, 0.0 }
 0x7f9   : > { %1104 = vadd.xlane.f32.xlu0 %v1103_v32 }
 0x823   : > { %v1026_v35 = vpop.f32.mrb[20].mxu1 }
 0x824   : > { %v1033_v37 = vadd.f32 %v1026_v35, %v1960_v33  ;;  %v1661_v38 = vpop.f32.mrb[21].mxu1  ;;  %v1729_v35 = vld [vmem:[%s2080_s9 + $0x18] sm:$0xff]  }
 0x825   : > { %v1029_v39 = vpop.f32.mrb[22].mxu1 }
 0x826   : > { %v1034_v40 = vadd.f32 %v1029_v39, %v1962_v36  ;;  %v1662_v41 = vpop.f32.mrb[23].mxu1 }
 0x882   : > { %v1102_v42 = vpop.xlane.xlu0 %1101 }
 0x883   : > { %1758 = vrcp.f32 %v1102_v42 }
 0x886   : > { %v1105_v43 = vpop.xlane.xlu0 %1104 }
 0x887   : > { %1760 = vrcp.f32 %v1105_v43 }
 0x88d   : > { %v1759_v44 = vpop.eup %1758 }
 0x88e   : > { %v1108_v46 = vmul.f32 %v1759_v44, %v1755_v29  ;;  %v1549_v29 = vld [vmem:[%s2077_s6] ss:$0 sm:$0xff] }
 0x891   : > { %v1761_v45 = vpop.eup %1760 }
 0x892   : > { %v1109_v47 = vmul.f32 %v1761_v45, %v1757_v31 }
 0x894   : > { %v1110_v48 = vpack.c.bf16 %v1109_v47, %v1108_v46 }
 0x896   : > { %1672 = vmatmul.mubr.msk.bf16.vlgmr.msra.gmra.mrb[24].mxu1 %vm571_vm3, %v1110_v48 }
 0x897   : > { %1685 = vmatprep.mubr.msk.bf16.mxu1 %vm1779_vm0, %v1778_v1 }
 0x969   : > { %v1151_v33 = vpop.f32.mrb[24].mxu1 }
 0x96a   : > { %v1673_v49 = vpop.f32.mrb[25].mxu1 }
 0x96b   : > { %v1154_v50 = vpop.f32.mrb[26].mxu1 }
 0x96c   : > { %v1158_v51 = vpack.c.bf16 %v1154_v50, %v1151_v33  ;;  %v1674_v36 = vpop.f32.mrb[27].mxu1 }
 0x96e   : > { %1678 = vmatmul.mubr.msk.bf16.vlgmr.msra.gmra.mrb[20].mxu0 %vm521_vm2, %v1158_v51 }
 0x96f   : > { %1697 = vmatprep.mubr.msk.bf16.mxu0 %vm1779_vm0, %v1778_v1  ;;  %1690 = vmatpush3.bf16.msra.mxu0 %v1726_v15 }
 0x970   : > { %1691 = vmatprep.subr.bf16.mxu0 %v1778_v1 }
 0x973   : > { %1692 = vmatpush3.bf16.msra.mxu0 %v1727_v16 }
 0x974   : > { %1693 = vmatprep.subr.bf16.mxu0 %v1778_v1 }
 0x977   : > { %1694 = vmatpush3.bf16.msra.mxu0 %v1728_v34 }
 0x978   : > { %1695 = vmatprep.subr.bf16.mxu0 %v1778_v1 }
 0x97b   : > { %1696 = vmatpush3.bf16.msra.mxu0 %v1729_v35 }
 0xa41   : > { %v1199_v52 = vpop.f32.mrb[20].mxu0 }
 0xa42   : > { %v1206_v54 = vadd.f32 %v1199_v52, %v1033_v37  ;;  %v1679_v55 = vpop.f32.mrb[21].mxu0  ;;  %v1550_v37 = vld [vmem:[%s2079_s8] ss:$0 sm:$0xff] }
 0xa43   : > { %v1202_v56 = vpop.f32.mrb[22].mxu0 }
 0xa44   : > { %v1215_v57 = vadd.f32 %v1547_v53, %v1206_v54  ;;  %v1207_v58 = vadd.f32 %v1202_v56, %v1034_v40  ;;  %v1680_v59 = vpop.f32.mrb[23].mxu0 }
 0xa46   : > { %v1216_v60 = vadd.f32 %v1547_v53, %v1207_v58  ;;  %v1217_v61 = vadd.f32 %v1215_v57, %v1891_v3 }
 0xa48   : > { %v1219_v62 = vsel %vm468_vm1, %v1217_v61, 0.0  ;;  %v1218_v63 = vadd.f32 %v1216_v60, %v1893_v4  ;;  %v1724_v4 = vld [vmem:[%s2078_s7] sm:$0xff]  }
 0xa49   : > { %1220 = vadd.xlane.f32.xlu0 %v1219_v62  ;;  %1682 = vmatpush3.bf16.msra.mxu1 %v1724_v4 }
 0xa4a   : > { %v1222_v0 = vsel %vm468_vm1, %v1218_v63, 0.0  ;;  %1683 = vmatprep.subr.bf16.mxu1 %v1778_v1  ;;  %v1554_v1 = vld [vmem:[%s2081_s10] ss:$0 sm:$0xff] }
 0xa4d   : > { %1223 = vadd.xlane.f32.xlu0 %v1222_v0  ;;  %1684 = vmatpush3.bf16.msra.mxu1 %v1725_v14 }
 0xad6   : > { %v1221_v2 = vpop.xlane.xlu0 %1220 }
 0xad7   : > { %v1226_v5 = vmul.f32 0.03125, %v1221_v2 }
 0xad9   : > { %v1228_v6 = vsub.f32 %v1217_v61, %v1226_v5 }
 0xada   : > { %v1224_v7 = vpop.xlane.xlu0 %1223 }
 0xadb   : > { %v1227_v8 = vmul.f32 0.03125, %v1224_v7  ;;  %v1230_v9 = vmul.f32 %v1228_v6, %v1228_v6 }
 0xadd   : > { %v1229_v10 = vsub.f32 %v1218_v63, %v1227_v8  ;;  %v1232_v11 = vsel %vm468_vm1, %v1230_v9, 0.0 }
 0xade   : > { %1233 = vadd.xlane.f32.xlu0 %v1232_v11  ;;  %v1560_v11 = vld [vmem:[%s2082_s11] ss:$0 sm:$0xff] }
 0xadf   : > { %v1231_v12 = vmul.f32 %v1229_v10, %v1229_v10 }
 0xae1   : > { %v1235_v3 = vsel %vm468_vm1, %v1231_v12, 0.0 }
 0xae2   : > { %1236 = vadd.xlane.f32.xlu0 %v1235_v3  ;;  %v1561_v3 = vld [vmem:[%s2083_s12] ss:$0 sm:$0xff] }
 0xb6b   : > { %v1234_v17 = vpop.xlane.xlu0 %1233 }
 0xb6c   : > { %v1238_v18 = vmul.f32 0.03125, %v1234_v17 }
 0xb6e   : > { %v1240_v19 = vadd.f32 1e-05, %v1238_v18 }
 0xb6f   : > { %v1237_v20 = vpop.xlane.xlu0 %1236 }
 0xb70   : > { %1762 = vrsqrt.f32 %v1240_v19  ;;  %v1239_v21 = vmul.f32 0.03125, %v1237_v20 }
 0xb72   : > { %v1241_v22 = vadd.f32 1e-05, %v1239_v21 }
 0xb74   : > { %1764 = vrsqrt.f32 %v1241_v22 }
 0xb7a   : > { %v1763_v23 = vpop.eup %1762 }
 0xb7b   : > { %v1244_v24 = vmul.f32 %v1763_v23, %v1228_v6 }
 0xb7d   : > { %v1253_v27 = vmul.f32 %v1548_v25, %v1244_v24 }
 0xb7e   : > { %v1765_v26 = vpop.eup %1764 }
 0xb7f   : > { %v1245_v28 = vmul.f32 %v1765_v26, %v1229_v10  ;;  %v1262_v31 = vadd.f32 %v1549_v29, %v1253_v27 }
 0xb81   : > { %v1254_v30 = vmul.f32 %v1548_v25, %v1245_v28 }
 0xb83   : > { %v1263_v32 = vadd.f32 %v1549_v29, %v1254_v30 }
 0xb85   : > { %v1264_v13 = vpack.c.bf16 %v1263_v32, %v1262_v31 }
 0xb87   : > { %1686 = vmatmul.mubr.msk.bf16.vlgmr.msra.gmra.mrb[28].mxu1 %vm468_vm1, %v1264_v13 }
 0xc5a   : > { %v1325_v38 = vpop.f32.mrb[28].mxu1 }
 0xc5b   : > { %v1326_v39 = vadd.f32 %v1550_v37, %v1325_v38  ;;  %v1687_v40 = vpop.f32.mrb[29].mxu1 }
 0xc5c   : > { %v1328_v41 = vpop.f32.mrb[30].mxu1 }
 0xc5d   : > { %v1329_v42 = vadd.f32 %v1550_v37, %v1328_v41  ;;  %v1688_v43 = vpop.f32.mrb[31].mxu1  ;;  %v1332_v44 = vmax.f32 %v1326_v39, 0.0 }
 0xc5f   : > { %v1333_v45 = vmax.f32 %v1329_v42, 0.0 }
 0xc61   : > { %v1334_v46 = vpack.c.bf16 %v1333_v45, %v1332_v44 }
 0xc63   : > { %1698 = vmatmul.mubr.msk.bf16.vlgmr.msra.gmra.mrb[24].mxu0 %vm1374_vm5, %v1334_v46 }
 0xd36   : > { %v1412_v47 = vpop.f32.mrb[24].mxu0 }
 0xd37   : > { %v1413_v48 = vadd.f32 %v1554_v1, %v1412_v47  ;;  %v1699_v33 = vpop.f32.mrb[25].mxu0 }
 0xd38   : > { %v1415_v49 = vpop.f32.mrb[26].mxu0 }
 0xd39   : > { %v1416_v50 = vadd.f32 %v1554_v1, %v1415_v49  ;;  %v1700_v51 = vpop.f32.mrb[27].mxu0  ;;  %v1419_v36 = vadd.f32 %v1413_v48, %v1262_v31 }
 0xd3b   : > { %v1421_v52 = vsel %vm468_vm1, %v1419_v36, 0.0  ;;  %v1420_v53 = vadd.f32 %v1416_v50, %v1263_v32 }
 0xd3c   : > { %1422 = vadd.xlane.f32.xlu1 %v1421_v52 }
 0xd3d   : > { %v1424_v54 = vsel %vm468_vm1, %v1420_v53, 0.0 }
 0xd3e   : > { %1425 = vadd.xlane.f32.xlu0 %v1424_v54 }
 0xdc9   : > { %v1423_v55 = vpop.xlane.xlu1 %1422 }
 0xdca   : > { %v1427_v56 = vmul.f32 0.03125, %v1423_v55 }
 0xdcb   : > { %v1426_v57 = vpop.xlane.xlu0 %1425 }
 0xdcc   : > { %v1429_v58 = vsub.f32 %v1419_v36, %v1427_v56  ;;  %v1428_v59 = vmul.f32 0.03125, %v1426_v57 }
 0xdce   : > { %v1430_v60 = vsub.f32 %v1420_v53, %v1428_v59  ;;  %v1431_v61 = vmul.f32 %v1429_v58, %v1429_v58 }
 0xdd0   : > { %v1433_v62 = vsel %vm468_vm1, %v1431_v61, 0.0  ;;  %v1432_v63 = vmul.f32 %v1430_v60, %v1430_v60 }
 0xdd1   : > { %1434 = vadd.xlane.f32.xlu0 %v1433_v62 }
 0xdd2   : > { %v1436_v0 = vsel %vm468_vm1, %v1432_v63, 0.0 }
 0xdd5   : > { %1437 = vadd.xlane.f32.xlu0 %v1436_v0 }
 0xe5e   : > { %v1435_v2 = vpop.xlane.xlu0 %1434 }
 0xe5f   : > { %v1439_v5 = vmul.f32 0.03125, %v1435_v2 }
 0xe61   : > { %v1441_v6 = vadd.f32 1e-05, %v1439_v5 }
 0xe62   : > { %v1438_v7 = vpop.xlane.xlu0 %1437 }
 0xe63   : > { %1766 = vrsqrt.f32 %v1441_v6  ;;  %v1440_v8 = vmul.f32 0.03125, %v1438_v7 }
 0xe65   : > { %v1442_v9 = vadd.f32 1e-05, %v1440_v8 }
 0xe67   : > { %1768 = vrsqrt.f32 %v1442_v9 }
 0xe6d   : > { %v1767_v10 = vpop.eup %1766 }
 0xe6e   : > { %v1445_v12 = vmul.f32 %v1767_v10, %v1429_v58 }
 0xe70   : > { %v1454_v4 = vmul.f32 %v1560_v11, %v1445_v12 }
 0xe71   : > { %v1769_v14 = vpop.eup %1768 }
 0xe72   : > { %v1463_v15 = vadd.f32 %v1561_v3, %v1454_v4  ;;  %v1446_v16 = vmul.f32 %v1769_v14, %v1430_v60 }
 0xe74   : > { %1465 = vst.msk [vmem:[%s440_s27] sm:$0xff] %vm468_vm1, %v1463_v15  ;;  %v1455_v17 = vmul.f32 %v1560_v11, %v1446_v16 }
 0xe76   : > { %v1464_v18 = vadd.f32 %v1561_v3, %v1455_v17 }
 0xe78   : > { %1466 = vst.msk [vmem:[%s440_s27 + $0x8] sm:$0xff] %vm468_vm1, %v1464_v18 }
 0xe79 PF: > { %s23_s25 = sadd.s32 1, %s1776_s25  }
 0xe7a   : > { %p20_p4 = scmp.ge.s32.totalorder %s23_s25, 4  }
 0xe7c   :  { %22 = sbr.rel (!%p20_p4) target bundleno = 1 (0x1), region = 102 }

</bundles_post_ra>
